<compile_context>
chip_gen: v7x
topology: tpu7x:2x2x1
jax: 0.10.0
libtpu: 0.0.40
codegen_flags: <defaults>
</compile_context>

<pallas_src>
import functools

import jax
import jax.numpy as jnp
import numpy as np
from jax import lax
from jax.experimental import pallas as pl
from jax.experimental.pallas import tpu as pltpu


def _edge_type_embedding_kernel(
    q_idx_ref,    # (N, 4)  int32, resident: [res, chain, entity, sym] per node
    k_idx_ref,    # (4, tk) int32  key-side block
    *refs,        # tab_hi_ref[, tab_lo_ref], out_ref
    max_res_offset, max_sym_offset, v_res, cq, n_tabs,
):
    tab_refs = refs[:n_tabs]
    out_ref = refs[n_tabs]
    tq, tk, d = out_ref.shape
    v_pad = tab_refs[0].shape[0]
    qi = pl.program_id(0)

    k_idx = k_idx_ref[...]                                                # (4, tk)
    res_k, chain_k, ent_k, sym_k = (k_idx[c:c + 1, :] for c in range(4))  # (1, tk)

    # Lane iota over the zero-padded fused-table rows; broadcast inside the
    # compares — no (tq, tk, v_pad) int32 temporary is ever materialized.
    iota_v = lax.broadcasted_iota(jnp.int32, (1, 1, v_pad), 2)

    num_chunks = tq // cq

    @pl.loop(0, num_chunks)
    def _(c):
        # Global query-row offset (q_idx is resident/full), local output offset.
        q0 = pl.multiple_of(qi * tq + c * cq, cq)
        o0 = pl.multiple_of(c * cq, cq)

        q_idx = q_idx_ref[pl.ds(q0, cq), :]                               # (cq, 4)
        res_q, chain_q = q_idx[:, 0:1], q_idx[:, 1:2]
        ent_q, sym_q = q_idx[:, 2:3], q_idx[:, 3:4]

        # relative residue offset, clamped, cross-chain sentinel   -> (cq, tk)
        rel_res = jnp.clip(res_k - res_q + max_res_offset, 0, 2 * max_res_offset)
        rel_res = jnp.where(chain_k == chain_q, rel_res, 2 * max_res_offset + 1)
        # relative symmetry offset, clamped, cross-entity sentinel -> (cq, tk)
        rel_sym = jnp.clip(sym_k - sym_q + max_sym_offset, 0, 2 * max_sym_offset)
        rel_sym = jnp.where(ent_k == ent_q, rel_sym, 2 * max_sym_offset + 1)

        # Fused lookup: one "two-hot" bf16 row per (q, k) pair against the
        # concatenated [res; sym] table does res_emb[rel_res] + sym_emb[rel_sym]
        # in a single MXU pass (0/1 is exact in bf16).
        two_hot = jnp.logical_or(
            iota_v == rel_res[..., None],
            iota_v == (rel_sym + v_res)[..., None],
        ).reshape(cq * tk, v_pad).astype(jnp.bfloat16)

        acc = jnp.dot(two_hot, tab_refs[0][...], preferred_element_type=jnp.float32)
        if n_tabs == 2:
            # Exact-vs-f32 path: table = hi + lo (both bf16); second bf16 dot
            # recovers the low-order bits (~2^-16 relative) at ~1/4 the cost of
            # a single f32 MXU matmul.
            acc = acc + jnp.dot(two_hot, tab_refs[1][...],
                                preferred_element_type=jnp.float32)

        # dropout(p=0.0) is identity for this module's default config.
        out_ref[pl.ds(o0, cq), :, :] = acc.reshape(cq, tk, d).astype(out_ref.dtype)


def _pick_tiles(n, d, out_itemsize, vmem_cap):
    """Generation-aware tiles: lane-dense, >=1 MiB blocks, VMEM-safe."""
    # Key tile = lane dim of the k-index block: multiple of 128, or full N.
    if n % 256 == 0 and n >= 1024:
        tk = 256
    elif n % 128 == 0:
        tk = 128
    else:
        tk = n
    # Output-block target ~ VMEM/16: 4 MiB on 64 MiB parts (v7x), 8 MiB on
    # 128 MiB parts (v5e/v6e). The block is double-buffered by the pipeline and
    # the chunked intermediates add only ~1 MiB on top.
    target = max(1 << 20, vmem_cap // 16)
    row_bytes = tk * d * out_itemsize
    tq_cap = max(1, int(target // row_bytes))
    tq = 1
    for c in range(min(n, tq_cap), 0, -1):      # largest divisor of n <= cap
        if n % c == 0:
            tq = c
            break
    # Guarantee >= 2 grid steps so both v7x TensorCores get work.
    if (n // tq) * (n // tk) < 2:
        for c in range(tq // 2, 0, -1):
            if n % c == 0:
                tq = c
                break
    return tq, tk


def _pick_chunk(tq, tk):
    """Chunk the tq*tk pair axis into ~512-row pieces (bounded live ranges)."""
    if tk % 8 != 0:          # ragged key axis: avoid non-tile-aligned reshapes
        return 1
    limit = max(1, 512 // tk)
    for c in range(min(tq, limit), 0, -1):
        if tq % c == 0:
            return c
    return 1


def edge_type_embedding(residue_index, chain_id, entity_id, sym_id,
                        res_table, sym_table, *,
                        max_res_offset, max_sym_offset,
                        tq=None, tk=None, out_dtype=None):
    # TODO(synk): knn_key_index gather path (left_gather) not implemented; this
    #             kernel computes the knn_key_index=None (dense [Q, K, d]) path.
    # TODO(synk): training-mode dropout (p > 0) not implemented (module default p=0).
    # TODO(synk): the BesselBasis + MLP halves of EdgeEmb are separate ops and
    #             not part of this kernel.
    n = int(residue_index.shape[0])
    d = int(res_table.shape[1])
    v_res = int(res_table.shape[0])
    v_sym = int(sym_table.shape[0])
    v_tot = v_res + v_sym
    v_pad = max(128, ((v_tot + 127) // 128) * 128)   # clean MXU K / iota extent

    # NOTE: bf16 output is strongly recommended when the consumer tolerates it:
    # the kernel is HBM-write bound (N^2*d output bytes vs negligible inputs),
    # so halving the store width is ~2x end-to-end. Default keeps the module's
    # f32 output dtype for parity with the PyTorch reference.
    out_dtype = jnp.dtype(res_table.dtype) if out_dtype is None else jnp.dtype(out_dtype)
    out_itemsize = out_dtype.itemsize

    try:
        vmem_cap = int(pltpu.get_tpu_info().vmem_capacity_bytes)
    except Exception:
        vmem_cap = 64 << 20        # conservative (v7x-sized) fallback

    tq0, tk0 = _pick_tiles(n, d, out_itemsize, vmem_cap)
    tq = tq0 if tq is None else int(tq)
    tk = tk0 if tk is None else int(tk)
    if n % tq or n % tk:
        raise ValueError(f"N={n} must be divisible by tiles (tq={tq}, tk={tk})")
    if not (tk % 128 == 0 or tk == n):
        raise ValueError(f"key tile tk={tk} must be a multiple of 128 or == N")
    cq = _pick_chunk(tq, tk)

    to_i32 = lambda x: x.astype(jnp.int32)
    q_idx = jnp.stack([to_i32(residue_index), to_i32(chain_id),
                       to_i32(entity_id), to_i32(sym_id)], axis=1)        # (N, 4)
    k_idx = q_idx.T                                                       # (4, N)

    # Fused [res; sym] table, zero-padded to v_pad rows, split into bf16 hi/lo.
    table = jnp.concatenate([res_table.astype(jnp.float32),
                             sym_table.astype(jnp.float32)], axis=0)
    table = jnp.pad(table, ((0, v_pad - v_tot), (0, 0)))
    tab_hi = table.astype(jnp.bfloat16)
    tables = [tab_hi]
    if out_itemsize >= 4:
        tab_lo = (table - tab_hi.astype(jnp.float32)).astype(jnp.bfloat16)
        tables.append(tab_lo)
    n_tabs = len(tables)

    kernel = functools.partial(
        _edge_type_embedding_kernel,
        max_res_offset=int(max_res_offset), max_sym_offset=int(max_sym_offset),
        v_res=v_res, cq=cq, n_tabs=n_tabs,
    )

    # VMEM accounting: double-buffered output block + per-chunk temporaries
    # (two-hot, compare masks, f32 accumulator) + resident indices/tables.
    out_block = tq * tk * d * out_itemsize
    chunk_tmp = cq * tk * (6 * v_pad + 8 * d)
    resident = n * 16 + 2 * tk * 16 + 2 * n_tabs * v_pad * d * 2
    vmem_est = 2 * out_block + chunk_tmp + resident + (4 << 20)
    vmem_cap_limit = (48 << 20) if vmem_cap <= (64 << 20) else (100 << 20)
    vmem_limit = int(min(max(vmem_est, 32 << 20), vmem_cap_limit))

    tab_spec = pl.BlockSpec((v_pad, d), lambda qi, kj: (0, 0))
    grid_spec = pltpu.PrefetchScalarGridSpec(
        num_scalar_prefetch=0,
        grid=(n // tq, n // tk),
        in_specs=[pl.BlockSpec((n, 4), lambda qi, kj: (0, 0)),    # query idx (resident)
                  pl.BlockSpec((4, tk), lambda qi, kj: (0, kj))]  # key idx block
                 + [tab_spec] * n_tabs,                           # fused bf16 table(s)
        out_specs=pl.BlockSpec((tq, tk, d), lambda qi, kj: (qi, kj, 0)),
    )

    cost = pl.CostEstimate(
        flops=2 * n * n * v_pad * d * n_tabs,
        transcendentals=0,
        bytes_accessed=n * n * d * out_itemsize + 2 * n * 16 + n_tabs * v_pad * d * 2,
    )

    return pl.pallas_call(
        kernel,
        out_shape=jax.ShapeDtypeStruct((n, n, d), out_dtype),
        grid_spec=grid_spec,
        compiler_params=pltpu.CompilerParams(
            dimension_semantics=("parallel", "parallel"),
            vmem_limit_bytes=vmem_limit,
        ),
        cost_estimate=cost,
    )(q_idx, k_idx, *tables)


def edge_type_embedding_ref(residue_index, chain_id, entity_id, sym_id,
                            res_table, sym_table,
                            *, max_res_offset, max_sym_offset):
    """Pure-JAX reference mirroring the PyTorch EdgeTypeEmbedding.forward."""
    same_chain = chain_id[None, :] == chain_id[:, None]
    rel_res = residue_index[None, :] - residue_index[:, None]
    rel_res = jnp.clip(rel_res + max_res_offset, 0, 2 * max_res_offset)
    rel_res = jnp.where(same_chain, rel_res, 2 * max_res_offset + 1)

    same_ent = entity_id[None, :] == entity_id[:, None]
    rel_sym = sym_id[None, :] - sym_id[:, None]
    rel_sym = jnp.clip(rel_sym + max_sym_offset, 0, 2 * max_sym_offset)
    rel_sym = jnp.where(same_ent, rel_sym, 2 * max_sym_offset + 1)

    return res_table[rel_res] + sym_table[rel_sym]


if __name__ == "__main__":
    N = 256               # sequence length (Q == K == N; knn_key_index=None path)
    D = 128               # embedding dim (>=128 keeps output stores lane-dense)
    MAX_RES_OFFSET = 16   # -> res table has 2*16+2 = 34 rows
    MAX_SYM_OFFSET = 4    # -> sym table has 2*4+2  = 10 rows

    key = jax.random.PRNGKey(0)
    k1, k2, k3, k4, k5, k6 = jax.random.split(key, 6)

    residue_index = jax.random.randint(k1, (N,), 0, 200, dtype=jnp.int32)
    chain_id = jax.random.randint(k2, (N,), 0, 4, dtype=jnp.int32)
    entity_id = jax.random.randint(k3, (N,), 0, 3, dtype=jnp.int32)
    sym_id = jax.random.randint(k4, (N,), 0, 5, dtype=jnp.int32)

    # The module's init_linear_(..., 'zero') zero-inits the tables (trivially
    # zero output); use small random weights so the kernel is exercised.
    res_table = 0.02 * jax.random.normal(k5, (2 * MAX_RES_OFFSET + 2, D), dtype=jnp.float32)
    sym_table = 0.02 * jax.random.normal(k6, (2 * MAX_SYM_OFFSET + 2, D), dtype=jnp.float32)

    ref = edge_type_embedding_ref(
        residue_index, chain_id, entity_id, sym_id, res_table, sym_table,
        max_res_offset=MAX_RES_OFFSET, max_sym_offset=MAX_SYM_OFFSET)

    # 1) f32 output (module parity): hi/lo bf16 split-table path, near-exact.
    out_f32 = edge_type_embedding(
        residue_index, chain_id, entity_id, sym_id, res_table, sym_table,
        max_res_offset=MAX_RES_OFFSET, max_sym_offset=MAX_SYM_OFFSET,
        out_dtype=jnp.float32)
    out_f32 = jax.block_until_ready(out_f32)
    assert out_f32.shape == (N, N, D) and out_f32.dtype == jnp.float32
    np.testing.assert_allclose(np.asarray(out_f32), np.asarray(ref),
                               rtol=1e-4, atol=1e-5)

    # 2) bf16 output (recommended, HBM-write-bound deployment): single bf16 dot.
    out_bf16 = edge_type_embedding(
        residue_index, chain_id, entity_id, sym_id, res_table, sym_table,
        max_res_offset=MAX_RES_OFFSET, max_sym_offset=MAX_SYM_OFFSET,
        out_dtype=jnp.bfloat16)
    out_bf16 = jax.block_until_ready(out_bf16)
    assert out_bf16.shape == (N, N, D) and out_bf16.dtype == jnp.bfloat16
    np.testing.assert_allclose(np.asarray(out_bf16, dtype=np.float32),
                               np.asarray(ref), rtol=2e-2, atol=3e-3)

    print("KERNEL_OK")
</pallas_src>

<mosaic_0001>
module attributes {stable_mosaic.version = 11 : i64} {
  func.func @_edge_type_embedding_kernel(%arg0: i32, %arg1: i32, %arg2: memref<256x4xi32, #tpu.memory_space<vmem>>, %arg3: memref<4x128xi32, #tpu.memory_space<vmem>>, %arg4: memref<128x128xbf16, #tpu.memory_space<vmem>>, %arg5: memref<128x128xbf16, #tpu.memory_space<vmem>>, %arg6: memref<64x128x128xf32, #tpu.memory_space<vmem>>) attributes {dimension_semantics = [#tpu.dimension_semantics<parallel>, #tpu.dimension_semantics<parallel>], iteration_bounds = array<i64: 4, 2>, scalar_prefetch = 0 : i64, scratch_operands = 0 : i64, tpu.core_type = #tpu.core_type<tc>, window_params = [{pipeline_mode = #tpu.pipeline_mode<synchronous>, transform_indices = @transform_0, window_bounds = array<i64: 256, 4>}, {transform_indices = @transform_1, window_bounds = array<i64: 4, 128>}, {pipeline_mode = #tpu.pipeline_mode<synchronous>, transform_indices = @transform_2, window_bounds = array<i64: 128, 128>}, {pipeline_mode = #tpu.pipeline_mode<synchronous>, transform_indices = @transform_3, window_bounds = array<i64: 128, 128>}, {transform_indices = @transform_4, window_bounds = array<i64: 64, 128, 128>}]} {
    %c0 = arith.constant 0 : index
    %c0_0 = arith.constant 0 : index
    %0 = vector.load %arg3[%c0, %c0_0] : memref<4x128xi32, #tpu.memory_space<vmem>>, vector<4x128xi32>
    %1 = vector.extract_strided_slice %0 {offsets = [0, 0], sizes = [1, 128], strides = [1, 1]} : vector<4x128xi32> to vector<1x128xi32>
    %2 = vector.extract_strided_slice %0 {offsets = [1, 0], sizes = [1, 128], strides = [1, 1]} : vector<4x128xi32> to vector<1x128xi32>
    %3 = vector.extract_strided_slice %0 {offsets = [2, 0], sizes = [1, 128], strides = [1, 1]} : vector<4x128xi32> to vector<1x128xi32>
    %4 = vector.extract_strided_slice %0 {offsets = [3, 0], sizes = [1, 128], strides = [1, 1]} : vector<4x128xi32> to vector<1x128xi32>
    %5 = tpu.iota {dimensions = array<i32: 2>} : vector<1x1x128xi32>
    %c0_i32 = arith.constant 0 : i32
    %c16_i32 = arith.constant 16 : i32
    %6 = arith.addi %c0_i32, %c16_i32 : i32
    %c1_i32 = arith.constant 1 : i32
    scf.for %arg7 = %c0_i32 to %6 step %c1_i32  : i32 {
      %c1_i32_2 = arith.constant 1 : i32
      %7 = arith.muli %arg7, %c1_i32_2 : i32
      %c0_i32_3 = arith.constant 0 : i32
      %8 = arith.addi %c0_i32_3, %7 : i32
      %c64_i32 = arith.constant 64 : i32
      %9 = arith.muli %arg0, %c64_i32 : i32
      %c4_i32 = arith.constant 4 : i32
      %10 = arith.muli %8, %c4_i32 : i32
      %11 = arith.addi %9, %10 : i32
      %12 = tpu.assume_multiple %11, 4 : i32
      %c4_i32_4 = arith.constant 4 : i32
      %13 = arith.muli %8, %c4_i32_4 : i32
      %14 = tpu.assume_multiple %13, 4 : i32
      %15 = arith.index_cast %12 : i32 to index
      %c0_5 = arith.constant 0 : index
      %16 = vector.load %arg2[%15, %c0_5] : memref<256x4xi32, #tpu.memory_space<vmem>>, vector<4x4xi32>
      %17 = vector.extract_strided_slice %16 {offsets = [0, 0], sizes = [4, 1], strides = [1, 1]} : vector<4x4xi32> to vector<4x1xi32>
      %18 = vector.extract_strided_slice %16 {offsets = [0, 1], sizes = [4, 1], strides = [1, 1]} : vector<4x4xi32> to vector<4x1xi32>
      %19 = vector.extract_strided_slice %16 {offsets = [0, 2], sizes = [4, 1], strides = [1, 1]} : vector<4x4xi32> to vector<4x1xi32>
      %20 = vector.extract_strided_slice %16 {offsets = [0, 3], sizes = [4, 1], strides = [1, 1]} : vector<4x4xi32> to vector<4x1xi32>
      %21 = vector.broadcast %1 : vector<1x128xi32> to vector<4x128xi32>
      %22 = vector.broadcast %17 : vector<4x1xi32> to vector<4x128xi32>
      %23 = arith.subi %21, %22 : vector<4x128xi32>
      %c16_i32_6 = arith.constant 16 : i32
      %24 = vector.broadcast %c16_i32_6 : i32 to vector<4x128xi32>
      %25 = arith.addi %23, %24 : vector<4x128xi32>
      %c0_i32_7 = arith.constant 0 : i32
      %c32_i32 = arith.constant 32 : i32
      %26 = vector.broadcast %c0_i32_7 : i32 to vector<4x128xi32>
      %27 = arith.maxsi %26, %25 : vector<4x128xi32>
      %28 = vector.broadcast %c32_i32 : i32 to vector<4x128xi32>
      %29 = arith.minsi %28, %27 : vector<4x128xi32>
      %30 = vector.broadcast %2 : vector<1x128xi32> to vector<4x128xi32>
      %31 = vector.broadcast %18 : vector<4x1xi32> to vector<4x128xi32>
      %32 = arith.cmpi eq, %30, %31 : vector<4x128xi32>
      %c33_i32 = arith.constant 33 : i32
      %33 = vector.broadcast %c33_i32 : i32 to vector<4x128xi32>
      %34 = arith.select %32, %29, %33 : vector<4x128xi1>, vector<4x128xi32>
      %35 = vector.broadcast %4 : vector<1x128xi32> to vector<4x128xi32>
      %36 = vector.broadcast %20 : vector<4x1xi32> to vector<4x128xi32>
      %37 = arith.subi %35, %36 : vector<4x128xi32>
      %c4_i32_8 = arith.constant 4 : i32
      %38 = vector.broadcast %c4_i32_8 : i32 to vector<4x128xi32>
      %39 = arith.addi %37, %38 : vector<4x128xi32>
      %c0_i32_9 = arith.constant 0 : i32
      %c8_i32 = arith.constant 8 : i32
      %40 = vector.broadcast %c0_i32_9 : i32 to vector<4x128xi32>
      %41 = arith.maxsi %40, %39 : vector<4x128xi32>
      %42 = vector.broadcast %c8_i32 : i32 to vector<4x128xi32>
      %43 = arith.minsi %42, %41 : vector<4x128xi32>
      %44 = vector.broadcast %3 : vector<1x128xi32> to vector<4x128xi32>
      %45 = vector.broadcast %19 : vector<4x1xi32> to vector<4x128xi32>
      %46 = arith.cmpi eq, %44, %45 : vector<4x128xi32>
      %c9_i32 = arith.constant 9 : i32
      %47 = vector.broadcast %c9_i32 : i32 to vector<4x128xi32>
      %48 = arith.select %46, %43, %47 : vector<4x128xi1>, vector<4x128xi32>
      %49 = vector.shape_cast %34 : vector<4x128xi32> to vector<4x128x1xi32>
      %50 = vector.broadcast %5 : vector<1x1x128xi32> to vector<4x128x128xi32>
      %51 = vector.broadcast %49 : vector<4x128x1xi32> to vector<4x128x128xi32>
      %52 = arith.cmpi eq, %50, %51 : vector<4x128x128xi32>
      %c34_i32 = arith.constant 34 : i32
      %53 = vector.broadcast %c34_i32 : i32 to vector<4x128xi32>
      %54 = arith.addi %48, %53 : vector<4x128xi32>
      %55 = vector.shape_cast %54 : vector<4x128xi32> to vector<4x128x1xi32>
      %56 = vector.broadcast %5 : vector<1x1x128xi32> to vector<4x128x128xi32>
      %57 = vector.broadcast %55 : vector<4x128x1xi32> to vector<4x128x128xi32>
      %58 = arith.cmpi eq, %56, %57 : vector<4x128x128xi32>
      %59 = arith.ori %52, %58 : vector<4x128x128xi1>
      %60 = vector.shape_cast %59 : vector<4x128x128xi1> to vector<512x128xi1>
      %61 = arith.extui %60 : vector<512x128xi1> to vector<512x128xi32>
      %62 = arith.sitofp %61 : vector<512x128xi32> to vector<512x128xf32>
      %63 = arith.truncf %62 : vector<512x128xf32> to vector<512x128xbf16>
      %c0_10 = arith.constant 0 : index
      %c0_11 = arith.constant 0 : index
      %64 = vector.load %arg4[%c0_10, %c0_11] : memref<128x128xbf16, #tpu.memory_space<vmem>>, vector<128x128xbf16>
      %cst = arith.constant dense<0.000000e+00> : vector<512x128xf32>
      %65 = tpu.matmul %63, %64, %cst {dimension_numbers = #tpu.dot_dimension_numbers<[1], [0], [0], [1], [0, 0, 1, 1], [], []>} : vector<512x128xbf16>, vector<128x128xbf16>, vector<512x128xf32> -> vector<512x128xf32>
      %c0_12 = arith.constant 0 : index
      %c0_13 = arith.constant 0 : index
      %66 = vector.load %arg5[%c0_12, %c0_13] : memref<128x128xbf16, #tpu.memory_space<vmem>>, vector<128x128xbf16>
      %cst_14 = arith.constant dense<0.000000e+00> : vector<512x128xf32>
      %67 = tpu.matmul %63, %66, %cst_14 {dimension_numbers = #tpu.dot_dimension_numbers<[1], [0], [0], [1], [0, 0, 1, 1], [], []>} : vector<512x128xbf16>, vector<128x128xbf16>, vector<512x128xf32> -> vector<512x128xf32>
      %68 = arith.addf %65, %67 : vector<512x128xf32>
      %69 = vector.shape_cast %68 : vector<512x128xf32> to vector<4x128x128xf32>
      %70 = arith.index_cast %14 : i32 to index
      %c0_15 = arith.constant 0 : index
      %c0_16 = arith.constant 0 : index
      %71 = vector.load %arg6[%70, %c0_15, %c0_16] : memref<64x128x128xf32, #tpu.memory_space<vmem>>, vector<4x128x128xf32>
      tpu.vector_store %arg6[%70, %c0_15, %c0_16], %69 {strides = array<i32>} : memref<64x128x128xf32, #tpu.memory_space<vmem>>, vector<4x128x128xf32>,
    }
    %c16_i32_1 = arith.constant 16 : i32
    return
  }
  func.func @transform_0(%arg0: i32, %arg1: i32) -> (i32, i32) {
    %c0_i32 = arith.constant 0 : i32
    %c0_i32_0 = arith.constant 0 : i32
    %c0_i32_1 = arith.constant 0 : i32
    return %c0_i32, %c0_i32_0 : i32, i32
  }
  func.func @transform_1(%arg0: i32, %arg1: i32) -> (i32, i32) {
    %c0_i32 = arith.constant 0 : i32
    %c0_i32_0 = arith.constant 0 : i32
    return %c0_i32, %arg1 : i32, i32
  }
  func.func @transform_2(%arg0: i32, %arg1: i32) -> (i32, i32) {
    %c0_i32 = arith.constant 0 : i32
    %c0_i32_0 = arith.constant 0 : i32
    %c0_i32_1 = arith.constant 0 : i32
    return %c0_i32, %c0_i32_0 : i32, i32
  }
  func.func @transform_3(%arg0: i32, %arg1: i32) -> (i32, i32) {
    %c0_i32 = arith.constant 0 : i32
    %c0_i32_0 = arith.constant 0 : i32
    %c0_i32_1 = arith.constant 0 : i32
    return %c0_i32, %c0_i32_0 : i32, i32
  }
  func.func @transform_4(%arg0: i32, %arg1: i32) -> (i32, i32, i32) {
    %c0_i32 = arith.constant 0 : i32
    %c0_i32_0 = arith.constant 0 : i32
    return %arg0, %arg1, %c0_i32 : i32, i32, i32
  }
}

</mosaic_0001>

<bundles_post_ra>
// kernel: tpu_custom_call.1
= control target key start
LH: loop header
LB: loop body
LE: loop exit
PB: predicated region body
PF: predicated region fallthrough
CT: control target
= control target key end

     0   :  { %s3891_s0 = inlined_call_operand.vmem [shape: s32[256,4], index: 0, kind: input, shape index: {}]   ;;  %s3892_s1 = inlined_call_operand.hbm [shape: s32[4,256], index: 1, kind: input, shape index: {}]   ;;  %s3893_s2 = inlined_call_operand.hbm [shape: bf16[128,128], index: 2, kind: input, shape index: {}]   ;;  %s3894_s3 = inlined_call_operand.hbm [shape: bf16[128,128], index: 3, kind: input, shape index: {}]   ;;  %s3895_s4 = inlined_call_operand.hbm [shape: f32[256,256,128], index: 4, kind: output, shape index: {}]  }
   0x1   :  { %3904 = sst [smem:[#allocation17_spill]] %s3893_s2 }
   0x2   :  { %3905 = sst [smem:[#allocation18_spill]] %s3894_s3 }
   0x3   :  { %3906 = sst [smem:[#allocation19_spill]] %s3895_s4 }
   0x4   :  { %9 = vsyncpa [#allocation3], 0 }
   0x5   :  { %11 = vsyncpa [#allocation3 + $0x1], 0 }
   0x6   :  { %12 = vsyncpa [#allocation6], 0 }
   0x7   :  { %13 = vsyncpa [#allocation4], 0 }
   0x8   :  { %15 = vsyncpa [#allocation4 + $0x1], 0  ;;  %s3086_s15 = smov 0   ;;  %s3088_s16 = smov 0  }
   0x9   :  { %s3090_s17 = smov 0   ;;  %s3092_s18 = smov 0  }
   0xa   :  { %s3094_s19 = smov 0   ;;  %s3096_s20 = smov 0  }
   0xb   :  { %s3098_s21 = smov 0   ;;  %s3100_s22 = smov 0  }
   0xc   :  { %s3102_s23 = smov 0   ;;  %s3104_s24 = smov 0  }
   0xd   :  { %s3106_s25 = smov 0  }
   0xe LB: > { %3907 = sst [smem:[#allocation14_spill]] %s2998_s15  ;;  %s2141_s26 = sadd.s32 4294967295, %s3038_s25   ;;  %s3038_s25 = sphi %s3106_s25, %s21_s25   ;;  %s3034_s24 = sphi %s3104_s24, %s3938_s24   ;;  %s3030_s23 = sphi %s3102_s23, %s3937_s23   ;;  %s3026_s22 = sphi %s3100_s22, %s3936_s22   ;;  %s3022_s21 = sphi %s3098_s21, %s3935_s21   ;;  %s3018_s20 = sphi %s3096_s20, %s3934_s20   ;;  %s3014_s19 = sphi %s3094_s19, %s3933_s19   ;;  %s3010_s18 = sphi %s3092_s18, %s3932_s18   ;;  %s3006_s17 = sphi %s3090_s17, %s3931_s17   ;;  %s3002_s16 = sphi %s3088_s16, %s3930_s16   ;;  %s2998_s15 = sphi %s3086_s15, %s3929_s15  }
   0xf   : > { %s2142_s27 = sadd.s32 4294967294, %s3038_s25   ;;  %p74_p0 = scmp.ne.s32.totalorder %s3014_s19, %s3010_s18 }
  0x10   : > { %p3142_p1 = scmp.eq.s32.totalorder %s2141_s26, 0  ;;  %p141_p2 = scmp.ne.s32.totalorder %s3006_s17, %s3002_s16 }
  0x11   : > { %p142_p3 = scmp.eq.s32.totalorder %s2141_s26, 7  ;;  %p147_p5 = scmp.ne.s32.totalorder %s3002_s16, %s2998_s15 }
  0x12   : > { %s3908_s28 = scalar_select %p3142_p1, 1, 0 }
  0x13   : > { %p3150_p4 = por %p3142_p1, %p74_p0  ;;  %p3156_p6 = por %p142_p3, %p141_p2 }
  0x14   : > { %p148_p7 = scmp.eq.s32.totalorder %s2142_s27, 7  ;;  %p2143_p8 = scmp.ge.s32.totalorder %s3038_s25, 1 }
  0x15   : > { %s3909_s29 = scalar_select %p3150_p4, 1, 0 }
  0x16   : > { %s3910_s30 = scalar_select %p3156_p6, 1, 0 }
  0x17   : > { %p155_p9 = scmp.lt.s32.totalorder %s3038_s25, 9  ;;  %p3162_p10 = por %p148_p7, %p147_p5 }
  0x18   : > { %s3044_s7 = smov [#allocation5]   ;;  %s3045_s10 = smov [#allocation7]  }
  0x19   : > { %s3911_s5 = scalar_select %p3162_p10, 1, 0 }
  0x1a   : > { %p3166_p11 = pnand %p2143_p8, %p155_p9  ;;  %s170_s8 = sshll.u32 %s3044_s7, 4  ;;  %s171_s8 = int_to_ptr.vmem [resolvable:$true] %s170_s8 }
  0x1b   : > { %3912 = sst [smem:[#allocation15_spill]] %s3911_s5  ;;  %s183_s11 = sshll.u32 %s3045_s10, 4  ;;  %s3178_s11 = int_to_ptr.vmem [resolvable:$true] %s183_s11 }
  0x1c   : > { %s3913_s6 = scalar_select %p3166_p11, 1, 0 }
  0x1d   : > { %p2696_p12 = pneg %p3166_p11  ;;  %s3915_s2 = sld [smem:[#allocation17_spill]] }
  0x1f   : > { %p3174_p13 = pnand %p2696_p12, %p3142_p1 }
  0x21   : > { %p2852_p2 = pneg %p3174_p13 }
  0x23   : > { %s2850_s14 = scalar_lea.hbm %s3915_s2, 1024 }
  0x24   : > { %p2851_p0 = scmp.ne.s32.totalorder %s3915_s2, %s2850_s14  ;;  %p2857_p7 = scmp.lt.u32.totalorder %s2850_s14, %s3915_s2 }
  0x26   : > { %p2853_p3 = pnand %p2852_p2, %p2851_p0 }
  0x28   : > { %p2854_p5 = pneg %p2853_p3 }
  0x2a   : > { %p2859_p8 = pnand %p2857_p7, %p2854_p5 }
  0x2c   : > { %2862 = shalt.err (!%p2859_p8)
}
  0x2d   : > { %s2863_s10 = scalar_lea.vmem %s171_s8, 1024  ;;  %p2871_p6 = scmp.lt.s32.totalorder %s171_s8, %s171_s8 }
  0x2e   : > { %p2864_p9 = scmp.ne.s32.totalorder %s171_s8, %s2863_s10  ;;  %p2872_p1 = scmp.lt.s32.totalorder %s2863_s10, %s2863_s10 }
  0x30   : > { %p2866_p12 = pnand %p2864_p9, %p2852_p2  ;;  %p2873_p4 = por %p2872_p1, %p2871_p6 }
  0x32   : > { %p2867_p10 = pneg %p2866_p12 }
  0x34   : > { %p2874_p11 = pnand %p2873_p4, %p2867_p10 }
  0x36   : > { %2877 = shalt.err (!%p2874_p11)
}
  0x37   : > { %s3046_s12 = smov 64   ;;  %s3047_s13 = smov 4  }
  0x38   : > { %2699 = dma.hbm_to_vmem [thread:$0]  (!%p3174_p13), %s3915_s2, 1024, %s171_s8, [#allocation6], %s3046_s12, %s3046_s12, %s3047_s13  }
  0x39   : > { %s3916_s3 = sld [smem:[#allocation18_spill]] }
  0x3f   : > { %s2878_s7 = scalar_lea.hbm %s3916_s3, 1024 }
  0x40   : > { %p2879_p0 = scmp.ne.s32.totalorder %s3916_s3, %s2878_s7  ;;  %p2885_p6 = scmp.lt.u32.totalorder %s2878_s7, %s3916_s3 }
  0x42   : > { %p2881_p1 = pnand %p2879_p0, %p2852_p2 }
  0x44   : > { %p2882_p4 = pneg %p2881_p1 }
  0x46   : > { %p2887_p10 = pnand %p2885_p6, %p2882_p4 }
  0x48   : > { %2890 = shalt.err (!%p2887_p10)
}
  0x49   : > { %s2891_s8 = scalar_lea.vmem %s3178_s11, 1024  ;;  %p2899_p7 = scmp.lt.s32.totalorder %s3178_s11, %s3178_s11 }
  0x4a   : > { %p2892_p11 = scmp.ne.s32.totalorder %s3178_s11, %s2891_s8  ;;  %p2900_p8 = scmp.lt.s32.totalorder %s2891_s8, %s2891_s8 }
  0x4c   : > { %p2894_p3 = pnand %p2892_p11, %p2852_p2  ;;  %p2901_p9 = por %p2900_p8, %p2899_p7 }
  0x4e   : > { %p2895_p5 = pneg %p2894_p3 }
  0x50   : > { %p2902_p12 = pnand %p2901_p9, %p2895_p5 }
  0x52   : > { %2905 = shalt.err (!%p2902_p12)
}
  0x53   : > { %2702 = dma.hbm_to_vmem [thread:$0]  (!%p3174_p13), %s3916_s3, 1024, %s3178_s11, [#allocation6], %s3046_s12, %s3046_s12, %s3047_s13  }
  0x54   : > { %s30_s5 = sadd.s32 1, %s3030_s23  ;;  %s33_s9 = sadd.s32 1, %s3034_s24 }
  0x55   : > { %p31_p2 = scmp.ge.s32.totalorder %s30_s5, 2  ;;  %s61_s14 = sadd.s32 1, %s3018_s20 }
  0x56   : > { %p68_p0 = scmp.ne.s32.totalorder %s3018_s20, %s3014_s19  ;;  %p69_p1 = scmp.eq.s32.totalorder %s3038_s25, 0 }
  0x57   : > { %s3940_s5 = smov (%p31_p2, %s30_s5), 0  ;;  %s3942_s9 = smov (!%p31_p2, %s33_s9), %s3034_s24 }
  0x58   : > { %3917 = sst [smem:[#allocation16_spill]] %s3940_s5  ;;  %s58_s18 = ssub.s32 %s3030_s23, %s3940_s5 }
  0x59   : > { %p35_p4 = scmp.ge.s32.totalorder %s3942_s9, 4  ;;  %p59_p6 = scmp.eq.s32.totalorder %s58_s18, 0 }
  0x5a   : > { %p3238_p10 = por %p69_p1, %p68_p0  ;;  %s131_s12 = sadd.s32 1, %s3006_s17 }
  0x5b   : > { %s3944_s9 = smov (%p35_p4, %s3942_s9), 0  ;;  %p2713_p13 = scmp.lt.s32.totalorder %s3038_s25, 8 }
  0x5c   : > { %s3246_s13 = scalar_select %p59_p6, %s3018_s20, %s61_s14  }
  0x5d   : > { %s126_s26 = ssub.s32 %s3034_s24, %s3944_s9  ;;  %s197_s7 = sand.u32 1, %s3018_s20  }
  0x5e   : > { %s128_s27 = sor.u32 %s126_s26, %s58_s18  ;;  %s2147_s10 = sshll.u32 %s197_s7, 2 }
  0x5f   : > { %p129_p11 = scmp.eq.s32.totalorder %s128_s27, 0  ;;  %s2148_s8 = sshll.u32 %s3030_s23, 6 }
  0x60   : > { %s3259_s3 = scalar_lea.hbm %s3892_s1, %s2148_s8  ;;  %s201_s14 = scalar_lea.vmem [#allocation2], %s2147_s10 }
  0x61   : > { %s3254_s4 = scalar_select %p129_p11, %s3006_s17, %s131_s12  }
  0x62   : > { %s208_s5 = sshll.u32 %s201_s14, 4  ;;  %p3263_p3 = pnand %p2713_p13, %p3238_p10  ;;  %s3267_s5 = int_to_ptr.vmem [resolvable:$true] %s208_s5 }
  0x63   : > { %s198_s12 = scalar_lea.sflag [#allocation3], %s197_s7  ;;  %s2906_s26 = scalar_lea.hbm %s3259_s3, 64 }
  0x64   : > { %p2907_p5 = scmp.ne.s32.totalorder %s3259_s3, %s2906_s26  ;;  %p2908_p7 = pneg %p3263_p3 }
  0x65   : > { %s2911_s11 = scalar_lea.hbm %s3892_s1, 128  ;;  %p2912_p12 = scmp.lt.u32.totalorder %s3259_s3, %s3892_s1 }
  0x66   : > { %p2909_p8 = pnand %p2908_p7, %p2907_p5  ;;  %p2913_p2 = scmp.lt.u32.totalorder %s2911_s11, %s2906_s26 }
  0x67   : > { %p2915_p1 = scmp.lt.u32.totalorder %s2906_s26, %s3259_s3 }
  0x68   : > { %p2910_p9 = pneg %p2909_p8  ;;  %p2914_p0 = por %p2913_p2, %p2912_p12 }
  0x6a   : > { %p2916_p4 = por %p2915_p1, %p2914_p0 }
  0x6c   : > { %p2917_p6 = pnand %p2916_p4, %p2910_p9 }
  0x6e   : > { %2920 = shalt.err (!%p2917_p6)
}
  0x6f   : > { %s2921_s7 = scalar_lea.vmem %s3267_s5, 64  ;;  %s3048_s15 = smov [#allocation2]  }
  0x70   : > { %p2922_p10 = scmp.ne.s32.totalorder %s3267_s5, %s2921_s7  ;;  %s2926_s14 = sshll.u32 %s3048_s15, 4  ;;  %s2927_s14 = int_to_ptr.vmem [resolvable:$false] %s2926_s14 }
  0x71   : > { %s2928_s2 = scalar_lea.vmem %s2927_s14, 128  ;;  %p2929_p5 = scmp.lt.s32.totalorder %s3267_s5, %s2927_s14 }
  0x72   : > { %p2924_p13 = pnand %p2922_p10, %p2908_p7  ;;  %p2930_p8 = scmp.lt.s32.totalorder %s2928_s2, %s2921_s7 }
  0x74   : > { %p2925_p11 = pneg %p2924_p13  ;;  %p2931_p12 = por %p2930_p8, %p2929_p5 }
  0x76   : > { %p2932_p2 = pnand %p2931_p12, %p2925_p11 }
  0x78   : > { %2935 = shalt.err (!%p2932_p2)
}
  0x79   : > { %2706 = dma.hbm_to_vmem [thread:$0]  (!%p3263_p3), %s3259_s3, 64, %s3267_s5, %s198_s12  }
  0x7a   : > { %p3920_p9 = scmp.ne.s32.totalorder %s3913_s6, 0 }
  0x7b   : > { %s219_s26 = sand.u32 (!%p3920_p9), 1, %s3014_s19   ;;  %p3921_p7 = scmp.ne.s32.totalorder (!%p3920_p9), %s3909_s29, 0 }
  0x7c   : > { %217 = sbr.rel (%p3920_p9) target bundleno = 887 (0x377), region = 36  ;;  %s2150_s27 = sshll.u32 (!%p3920_p9), %s219_s26, 2 }
  0x7d   : > { %s220_s11 = scalar_lea.sflag (!%p3920_p9), [#allocation3], %s219_s26  ;;  %s223_s10 = scalar_lea.vmem (!%p3920_p9), [#allocation2], %s2150_s27 }
  0x83   : > { %2985 = dma.done.wait (%p3921_p7), %s220_s11, 64  }
  0x84   : > { %2987 = vsyncadd (%p3921_p7), %s220_s11, 4294967232  ;;  %p3922_p0 = scmp.ne.s32.totalorder %s3908_s28, 0 }
  0x86   : > { %2989 = dma.done.wait (%p3922_p0), [#allocation6], 2048  }
  0x87   : > { %2991 = vsyncadd (%p3922_p0), [#allocation6], 4294965248  ;;  %s253_s3 = sand.u32 1, %s3002_s16   ;;  %v260_v0 = vlaneseq  ;;  %v3313_v2 = vld [vmem:[%s223_s10] sm:$0xf]  ;;  %s3316_s5 = smov 0  }
  0x88   : > { %s3308_s6 = sshll.u32 %s253_s3, 13 }
  0x89   : > { %v3311_v1 = vand.u32 127, %v260_v0  ;;  %s255_s29 = scalar_lea.vmem [#allocation8], %s3308_s6 }
  0x8a LB: >> { %s2154_s28 = sshll.u32 %s3026_s22, 6  ;;  %v3049_v3 = vmov 3   ;;  %v3050_v4 = vmov 2   ;;  %s2155_s18 = sshll.u32 %s3042_s5, 2  ;;  %v3051_v6 = vmov 0   ;;  %v3052_v7 = vmov 1   ;;  %s3042_s5 = sphi %s3316_s5, %s267_s5  }
  0x8b   : >> { %2829 = vset.pattern.permute.xlu0 %v3049_v3  ;;  %2831 = vset.pattern.permute.xlu1 %v3050_v4  ;;  %s270_s12 = sadd.s32 %s2155_s18, %s2154_s28  ;;  %v3327_v8 = vshrl.u32 %v260_v0, 7  ;;  %v2834_v25 = vld [vmem:[#allocation7] sm:$0xff]   ;;  %v2836_v28 = vld [vmem:[#allocation7 + $0x8] sm:$0xff]   ;;  %v2838_v31 = vld [vmem:[#allocation7 + $0x10] sm:$0xff]   ;;  %s2372_s14 = sshll.u32 %s3042_s5, 9 }
  0x8c   : >> { %s271_s15 = scalar_lea.vmem %s3891_s0, %s270_s12  ;;  %v2835_v26 = vld [vmem:[#allocation5] sm:$0xff]   ;;  %2454 = vmatprep.subr.bf16.mxu1 %v2834_v25  ;;  %v2837_v29 = vld [vmem:[#allocation5 + $0x8] sm:$0xff]   ;;  %v2839_v32 = vld [vmem:[#allocation5 + $0x10] sm:$0xff]   ;;  %s3762_s2 = scalar_lea.vmem %s255_s29, %s2372_s14 [#allocation8] }
  0x8d   : >> { %v272_v5 = vld [vmem:[%s271_s15] sm:$0xf]  ;;  %v3330_v9 = vsub.s32 0, %v3327_v8  ;;  %v3337_v13 = vsub.s32 1, %v3327_v8  ;;  %v3350_v24 = vsub.s32 3, %v3327_v8  ;;  %2534 = vmatprep.subr.bf16.mxu0 %v2835_v26  ;;  %2455 = vmatpush3.bf16.msra.mxu1 %v2834_v25  ;;  %v3363_v36 = vsub.s32 2, %v3327_v8 }
  0x8e   : >> { %300 = vperm.xlu0 %2829, %v272_v5   ;;  %313 = vperm.xlu1 %2831, %v272_v5   ;;  %v2840_v34 = vld [vmem:[#allocation7 + $0x18] sm:$0xff]   ;;  %v2842_v37 = vld [vmem:[#allocation7 + $0x20] sm:$0xff]   ;;  %v2844_v41 = vld [vmem:[#allocation7 + $0x28] sm:$0xff]   ;;  %s267_s5 = sadd.s32 1, %s3042_s5  }
  0x8f   : >> { %v276_v11 = vrot.slane %v3313_v2, %v3330_v9  ;;  %v289_v16 = vrot.slane %v3313_v2, %v3337_v13  ;;  %v298_v27 = vrot.slane %v3313_v2, %v3350_v24  ;;  %2535 = vmatpush3.bf16.msra.mxu0 %v2835_v26  ;;  %2456 = vmatprep.subr.bf16.mxu1 %v2836_v28  ;;  %v2841_v35 = vld [vmem:[#allocation5 + $0x18] sm:$0xff]   ;;  %v2843_v38 = vld [vmem:[#allocation5 + $0x20] sm:$0xff]   ;;  %v2845_v42 = vld [vmem:[#allocation5 + $0x28] sm:$0xff]   ;;  %p264_p3 = scmp.ge.s32.totalorder %s267_s5, 16  }
  0x90   : >> { %2536 = vmatprep.subr.bf16.mxu0 %v2837_v29  ;;  %v311_v40 = vrot.slane %v3313_v2, %v3363_v36  ;;  %v2846_v44 = vld [vmem:[#allocation7 + $0x30] sm:$0xff]   ;;  %v2848_v47 = vld [vmem:[#allocation7 + $0x38] sm:$0xff]   ;;  %s1979_s26 = scalar_lea.sflag (%p264_p3), [#allocation4], %s253_s3 }
  0x91   : >> { %2457 = vmatpush3.bf16.msra.mxu1 %v2836_v28  ;;  %v2847_v45 = vld [vmem:[#allocation5 + $0x30] sm:$0xff]   ;;  %v2849_v48 = vld [vmem:[#allocation5 + $0x38] sm:$0xff]  }
  0x92   : >> { %2830 = vset.pattern.permute.xlu0 %v3051_v6  ;;  %2832 = vset.pattern.permute.xlu1 %v3052_v7 }
  0x93   : >> { %278 = vperm.xlu0 %2830, %v272_v5   ;;  %291 = vperm.xlu1 %2832, %v272_v5  }
  0x94   : >> { %2537 = vmatpush3.bf16.msra.mxu0 %v2837_v29  ;;  %2458 = vmatprep.subr.bf16.mxu1 %v2838_v31 }
  0x95   : >> { %2538 = vmatprep.subr.bf16.mxu0 %v2839_v32  ;;  %2459 = vmatpush3.bf16.msra.mxu1 %v2838_v31 }
  0x96   : >> { %2460 = vmatprep.subr.bf16.mxu1 %v2840_v34 }
  0x97   : >> { %2833 = vset.pattern.permute.xlu0 %v3050_v4 }
  0x98   : >> { %2539 = vmatpush3.bf16.msra.mxu0 %v2839_v32 }
  0x99   : >> { %2540 = vmatprep.subr.bf16.mxu0 %v2841_v35  ;;  %2461 = vmatpush3.bf16.msra.mxu1 %v2840_v34 }
  0x9a   : >> { %2462 = vmatprep.subr.bf16.mxu1 %v2842_v37 }
  0x9c   : >> { %2541 = vmatpush3.bf16.msra.mxu0 %v2841_v35 }
  0x9d   : >> { %2542 = vmatprep.subr.bf16.mxu0 %v2843_v38  ;;  %2463 = vmatpush3.bf16.msra.mxu1 %v2842_v37 }
  0x9e   : >> { %2464 = vmatprep.subr.bf16.mxu1 %v2844_v41 }
  0xa0   : >> { %2543 = vmatpush3.bf16.msra.mxu0 %v2843_v38 }
  0xa1   : >> { %2544 = vmatprep.subr.bf16.mxu0 %v2845_v42  ;;  %2465 = vmatpush3.bf16.msra.mxu1 %v2844_v41 }
  0xa2   : >> { %2466 = vmatprep.subr.bf16.mxu1 %v2846_v44 }
  0xa4   : >> { %2545 = vmatpush3.bf16.msra.mxu0 %v2845_v42 }
  0xa5   : >> { %2546 = vmatprep.subr.bf16.mxu0 %v2847_v45  ;;  %2467 = vmatpush3.bf16.msra.mxu1 %v2846_v44 }
  0xa6   : >> { %2468 = vmatprep.subr.bf16.mxu1 %v2848_v47 }
  0xa8   : >> { %2547 = vmatpush3.bf16.msra.mxu0 %v2847_v45 }
  0xa9   : >> { %2548 = vmatprep.subr.bf16.mxu0 %v2849_v48  ;;  %2469 = vmatpush3.bf16.msra.mxu1 %v2848_v47 }
  0xac   : >> { %2549 = vmatpush3.bf16.msra.mxu0 %v2849_v48 }
 0x10d   : >> { %v301_v10 = vpop.permute.xlu0 %300  ;;  %v3334_v12 = vpop.permute.xlu1 %313 }
 0x10e   : >> { %v302_v30 = vsub.s32 %v298_v27, %v301_v10  ;;  %vm315_vm5 = vcmp.eq.s32.totalorder %v311_v40, %v3334_v12 }
 0x110   : >> { %v303_v33 = vadd.s32 4, %v302_v30 }
 0x112   : >> { %v279_v14 = vpop.permute.xlu0 %278  ;;  %v292_v18 = vpop.permute.xlu1 %291  ;;  %vm304_vm3 = vcmp.gt.s32.totalorder %v303_v33, 0 }
 0x113   : >> { %v280_v15 = vsub.s32 %v276_v11, %v279_v14  ;;  %vm293_vm1 = vcmp.eq.s32.totalorder %v289_v16, %v292_v18  ;;  %v305_v39 = vsel %vm304_vm3, %v303_v33, 0 }
 0x114   : >> { %vm306_vm4 = vcmp.lt.s32.totalorder %v305_v39, 8 }
 0x115   : >> { %v281_v17 = vadd.s32 16, %v280_v15  ;;  %v307_v43 = vsel %vm306_vm4, %v305_v39, 8 }
 0x116   : >> { %v316_v46 = vsel %vm315_vm5, %v307_v43, 9 }
 0x117   : >> { %vm282_vm0 = vcmp.gt.s32.totalorder %v281_v17, 0  ;;  %v3376_v49 = vadd.s32 34, %v316_v46 }
 0x118   : >> { %v283_v19 = vsel %vm282_vm0, %v281_v17, 0 }
 0x119   : >> { %vm284_vm2 = vcmp.lt.s32.totalorder %v283_v19, 32  ;;  %v653_v51 = vrot.slane %v3376_v49, %v3330_v9  ;;  %v720_v52 = vrot.slane %v3376_v49, %v3337_v13  ;;  %v3407_v61 = vrot.slane %v3376_v49, %v3363_v36 }
 0x11a   : >> { %v285_v20 = vsel %vm284_vm2, %v283_v19, 32 }
 0x11b   : >> { %v3341_v21 = vsel %vm293_vm1, %v285_v20, 33 }
 0x11c   : >> { %v320_v22 = vrot.slane %v3341_v21, %v3330_v9  ;;  %v3347_v23 = vrot.slane %v3341_v21, %v3337_v13  ;;  %v3380_v50 = vrot.slane %v3341_v21, %v3363_v36  ;;  %v3501_v33 = vrot.slane %v3341_v21, %v3350_v24 }
 0x11d   : >> { %v3053_v36 = vmov 1.0|1.0   ;;  %v3515_v21 = vrot.slane %v3376_v49, %v3350_v24 }
 0x11e   : >> { %326 = vbcast.lane.b32.xlu0 %v320_v22, 264  ;;  %322 = vbcast.lane.b32.xlu1 %v320_v22, 256 }
 0x122   : >> { %334 = vbcast.lane.b32.xlu0 %v320_v22, 280  ;;  %330 = vbcast.lane.b32.xlu1 %v320_v22, 272 }
 0x126   : >> { %342 = vbcast.lane.b32.xlu0 %v320_v22, 296  ;;  %338 = vbcast.lane.b32.xlu1 %v320_v22, 288 }
 0x12a   : >> { %350 = vbcast.lane.b32.xlu0 %v320_v22, 312  ;;  %346 = vbcast.lane.b32.xlu1 %v320_v22, 304 }
 0x12e   : >> { %358 = vbcast.lane.b32.xlu0 %v320_v22, 328  ;;  %354 = vbcast.lane.b32.xlu1 %v320_v22, 320 }
 0x132   : >> { %366 = vbcast.lane.b32.xlu0 %v320_v22, 344  ;;  %362 = vbcast.lane.b32.xlu1 %v320_v22, 336 }
 0x136   : >> { %374 = vbcast.lane.b32.xlu0 %v320_v22, 360  ;;  %370 = vbcast.lane.b32.xlu1 %v320_v22, 352 }
 0x13a   : >> { %382 = vbcast.lane.b32.xlu0 %v320_v22, 376  ;;  %378 = vbcast.lane.b32.xlu1 %v320_v22, 368 }
 0x13e   : >> { %393 = vbcast.lane.b32.xlu0 %v3347_v23, 264  ;;  %389 = vbcast.lane.b32.xlu1 %v3347_v23, 256 }
 0x142   : >> { %401 = vbcast.lane.b32.xlu0 %v3347_v23, 280  ;;  %397 = vbcast.lane.b32.xlu1 %v3347_v23, 272 }
 0x146   : >> { %409 = vbcast.lane.b32.xlu0 %v3347_v23, 296  ;;  %405 = vbcast.lane.b32.xlu1 %v3347_v23, 288 }
 0x14a   : >> { %417 = vbcast.lane.b32.xlu0 %v3347_v23, 312  ;;  %413 = vbcast.lane.b32.xlu1 %v3347_v23, 304 }
 0x14e   : >> { %425 = vbcast.lane.b32.xlu0 %v3347_v23, 328  ;;  %421 = vbcast.lane.b32.xlu1 %v3347_v23, 320 }
 0x152   : >> { %433 = vbcast.lane.b32.xlu0 %v3347_v23, 344  ;;  %429 = vbcast.lane.b32.xlu1 %v3347_v23, 336 }
 0x156   : >> { %441 = vbcast.lane.b32.xlu0 %v3347_v23, 360  ;;  %437 = vbcast.lane.b32.xlu1 %v3347_v23, 352 }
 0x15a   : >> { %449 = vbcast.lane.b32.xlu0 %v3347_v23, 376  ;;  %445 = vbcast.lane.b32.xlu1 %v3347_v23, 368 }
 0x15e   : >> { %460 = vbcast.lane.b32.xlu0 %v3380_v50, 264  ;;  %456 = vbcast.lane.b32.xlu1 %v3380_v50, 256 }
 0x162   : >> { %659 = vbcast.lane.b32.xlu0 %v653_v51, 264  ;;  %464 = vbcast.lane.b32.xlu1 %v3380_v50, 272 }
 0x166   : >> { %667 = vbcast.lane.b32.xlu0 %v653_v51, 280  ;;  %655 = vbcast.lane.b32.xlu1 %v653_v51, 256 }
 0x16a   : >> { %675 = vbcast.lane.b32.xlu0 %v653_v51, 296  ;;  %663 = vbcast.lane.b32.xlu1 %v653_v51, 272 }
 0x16e   : >> { %683 = vbcast.lane.b32.xlu0 %v653_v51, 312  ;;  %671 = vbcast.lane.b32.xlu1 %v653_v51, 288 }
 0x172   : >> { %691 = vbcast.lane.b32.xlu0 %v653_v51, 328  ;;  %679 = vbcast.lane.b32.xlu1 %v653_v51, 304 }
 0x176   : >> { %699 = vbcast.lane.b32.xlu0 %v653_v51, 344  ;;  %687 = vbcast.lane.b32.xlu1 %v653_v51, 320 }
 0x17a   : >> { %707 = vbcast.lane.b32.xlu0 %v653_v51, 360  ;;  %695 = vbcast.lane.b32.xlu1 %v653_v51, 336 }
 0x17e   : >> { %715 = vbcast.lane.b32.xlu0 %v653_v51, 376  ;;  %703 = vbcast.lane.b32.xlu1 %v653_v51, 352 }
 0x182   : >> { %726 = vbcast.lane.b32.xlu0 %v720_v52, 264  ;;  %711 = vbcast.lane.b32.xlu1 %v653_v51, 368 }
 0x186   : >> { %734 = vbcast.lane.b32.xlu0 %v720_v52, 280  ;;  %722 = vbcast.lane.b32.xlu1 %v720_v52, 256 }
 0x18a   : >> { %742 = vbcast.lane.b32.xlu0 %v720_v52, 296  ;;  %730 = vbcast.lane.b32.xlu1 %v720_v52, 272 }
 0x18e   : >> { %750 = vbcast.lane.b32.xlu0 %v720_v52, 312  ;;  %738 = vbcast.lane.b32.xlu1 %v720_v52, 288 }
 0x190   : >> { %v3389_v53 = vpop.permute.xlu0 %326  ;;  %v3391_v54 = vpop.permute.xlu1 %322 }
 0x191   : >> { %vm586_vm7 = vcmp.eq.s32.totalorder %v3311_v1, %v3389_v53  ;;  %vm585_vm9 = vcmp.eq.s32.totalorder %v3311_v1, %v3391_v54 }
 0x192   : >> { %758 = vbcast.lane.b32.xlu0 %v720_v52, 328  ;;  %746 = vbcast.lane.b32.xlu1 %v720_v52, 304 }
 0x194   : >> { %v3393_v55 = vpop.permute.xlu0 %334  ;;  %v3395_v56 = vpop.permute.xlu1 %330 }
 0x195   : >> { %vm588_vm14 = vcmp.eq.s32.totalorder %v3311_v1, %v3393_v55  ;;  %vm587_vm0 = vcmp.eq.s32.totalorder %v3311_v1, %v3395_v56 }
 0x196   : >> { %766 = vbcast.lane.b32.xlu0 %v720_v52, 344  ;;  %754 = vbcast.lane.b32.xlu1 %v720_v52, 320 }
 0x198   : >> { %v3397_v57 = vpop.permute.xlu0 %342  ;;  %v3399_v58 = vpop.permute.xlu1 %338 }
 0x199   : >> { %vm590_vm5 = vcmp.eq.s32.totalorder %v3311_v1, %v3397_v57 }
 0x19a   : >> { %774 = vbcast.lane.b32.xlu0 %v720_v52, 360  ;;  %762 = vbcast.lane.b32.xlu1 %v720_v52, 336 }
 0x19c   : >> { %v3401_v59 = vpop.permute.xlu0 %350  ;;  %v3403_v60 = vpop.permute.xlu1 %346 }
 0x19e   : >> { %782 = vbcast.lane.b32.xlu0 %v720_v52, 376  ;;  %770 = vbcast.lane.b32.xlu1 %v720_v52, 352 }
 0x1a0   : >> { %v3409_v62 = vpop.permute.xlu0 %358  ;;  %v3411_v63 = vpop.permute.xlu1 %354 }
 0x1a2   : >> { %793 = vbcast.lane.b32.xlu0 %v3407_v61, 264  ;;  %778 = vbcast.lane.b32.xlu1 %v720_v52, 368 }
 0x1a4   : >> { %v3414_v3 = vpop.permute.xlu0 %366  ;;  %v3416_v4 = vpop.permute.xlu1 %362 }
 0x1a6   : >> { %468 = vbcast.lane.b32.xlu0 %v3380_v50, 280  ;;  %789 = vbcast.lane.b32.xlu1 %v3407_v61, 256 }
 0x1a8   : >> { %v3420_v5 = vpop.permute.xlu0 %374  ;;  %v3422_v6 = vpop.permute.xlu1 %370 }
 0x1aa   : >> { %801 = vbcast.lane.b32.xlu0 %v3407_v61, 280  ;;  %797 = vbcast.lane.b32.xlu1 %v3407_v61, 272 }
 0x1ac   : >> { %v3426_v7 = vpop.permute.xlu0 %382  ;;  %v3428_v8 = vpop.permute.xlu1 %378 }
 0x1ae   : >> { %476 = vbcast.lane.b32.xlu0 %v3380_v50, 296  ;;  %472 = vbcast.lane.b32.xlu1 %v3380_v50, 288 }
 0x1b0   : >> { %v3432_v9 = vpop.permute.xlu0 %393  ;;  %v3434_v10 = vpop.permute.xlu1 %389 }
 0x1b2   : >> { %809 = vbcast.lane.b32.xlu0 %v3407_v61, 296  ;;  %805 = vbcast.lane.b32.xlu1 %v3407_v61, 288 }
 0x1b4   : >> { %v3438_v11 = vpop.permute.xlu0 %401  ;;  %v3440_v12 = vpop.permute.xlu1 %397 }
 0x1b6   : >> { %484 = vbcast.lane.b32.xlu0 %v3380_v50, 312  ;;  %480 = vbcast.lane.b32.xlu1 %v3380_v50, 304 }
 0x1b8   : >> { %v3444_v13 = vpop.permute.xlu0 %409  ;;  %v3446_v14 = vpop.permute.xlu1 %405 }
 0x1ba   : >> { %817 = vbcast.lane.b32.xlu0 %v3407_v61, 312  ;;  %813 = vbcast.lane.b32.xlu1 %v3407_v61, 304 }
 0x1bc   : >> { %v3450_v15 = vpop.permute.xlu0 %417  ;;  %v3452_v16 = vpop.permute.xlu1 %413 }
 0x1be   : >> { %492 = vbcast.lane.b32.xlu0 %v3380_v50, 328  ;;  %488 = vbcast.lane.b32.xlu1 %v3380_v50, 320 }
 0x1c0   : >> { %v3456_v17 = vpop.permute.xlu0 %425  ;;  %v3458_v18 = vpop.permute.xlu1 %421 }
 0x1c2   : >> { %825 = vbcast.lane.b32.xlu0 %v3407_v61, 328  ;;  %821 = vbcast.lane.b32.xlu1 %v3407_v61, 320 }
 0x1c4   : >> { %v3462_v19 = vpop.permute.xlu0 %433  ;;  %v3464_v20 = vpop.permute.xlu1 %429 }
 0x1c6   : >> { %500 = vbcast.lane.b32.xlu0 %v3380_v50, 344  ;;  %496 = vbcast.lane.b32.xlu1 %v3380_v50, 336 }
 0x1c8   : >> { %v3468_v22 = vpop.permute.xlu0 %441  ;;  %v3470_v23 = vpop.permute.xlu1 %437 }
 0x1ca   : >> { %833 = vbcast.lane.b32.xlu0 %v3407_v61, 344  ;;  %829 = vbcast.lane.b32.xlu1 %v3407_v61, 336 }
 0x1cc   : >> { %v3474_v25 = vpop.permute.xlu0 %449  ;;  %v3476_v26 = vpop.permute.xlu1 %445 }
 0x1ce   : >> { %508 = vbcast.lane.b32.xlu0 %v3380_v50, 360  ;;  %504 = vbcast.lane.b32.xlu1 %v3380_v50, 352 }
 0x1d0   : >> { %v3480_v27 = vpop.permute.xlu0 %460  ;;  %v3482_v28 = vpop.permute.xlu1 %456 }
 0x1d2   : >> { %841 = vbcast.lane.b32.xlu0 %v3407_v61, 360  ;;  %837 = vbcast.lane.b32.xlu1 %v3407_v61, 352 }
 0x1d4   : >> { %v660_v29 = vpop.permute.xlu0 %659  ;;  %v3486_v30 = vpop.permute.xlu1 %464 }
 0x1d5   : >> { %vm919_vm6 = vcmp.eq.s32.totalorder %v3311_v1, %v660_v29 }
 0x1d6   : >> { %516 = vbcast.lane.b32.xlu0 %v3380_v50, 376  ;;  %512 = vbcast.lane.b32.xlu1 %v3380_v50, 368  ;;  %vm983_vm10 = vmor %vm586_vm7, %vm919_vm6  ;;  %vm589_vm7 = vcmp.eq.s32.totalorder %v3311_v1, %v3399_v58 }
 0x1d8   : >> { %v668_v31 = vpop.permute.xlu0 %667  ;;  %v656_v32 = vpop.permute.xlu1 %655 }
 0x1d9   : >> { %vm918_vm8 = vcmp.eq.s32.totalorder %v3311_v1, %v656_v32  ;;  %vm921_vm11 = vcmp.eq.s32.totalorder %v3311_v1, %v668_v31 }
 0x1da   : >> { %849 = vbcast.lane.b32.xlu0 %v3407_v61, 376  ;;  %845 = vbcast.lane.b32.xlu1 %v3407_v61, 368  ;;  %vm982_vm12 = vmor %vm585_vm9, %vm918_vm8 }
 0x1db   : >> { %vm2228_vm13 = vmpackc.low %vm983_vm10, %vm982_vm12  ;;  %vm592_vm12 = vcmp.eq.s32.totalorder %v3311_v1, %v3401_v59 }
 0x1dc   : >> { %v676_v34 = vpop.permute.xlu0 %675  ;;  %v664_v35 = vpop.permute.xlu1 %663  ;;  %2470 = vmatprep.mubr.msk.bf16.mxu1 %vm2228_vm13, %v3053_v36  ;;  %2550 = vmatprep.mubr.msk.bf16.mxu0 %vm2228_vm13, %v3053_v36  ;;  %vm985_vm1 = vmor %vm588_vm14, %vm921_vm11  ;;  %vm591_vm14 = vcmp.eq.s32.totalorder %v3311_v1, %v3403_v60 }
 0x1dd   : >> { %vm920_vm15 = vcmp.eq.s32.totalorder %v3311_v1, %v664_v35  ;;  %vm923_vm2 = vcmp.eq.s32.totalorder %v3311_v1, %v676_v34 }
 0x1de   : >> { %527 = vbcast.lane.b32.xlu0 %v3501_v33, 264  ;;  %523 = vbcast.lane.b32.xlu1 %v3501_v33, 256  ;;  %vm984_vm3 = vmor %vm587_vm0, %vm920_vm15 }
 0x1df   : >> { %vm2230_vm4 = vmpackc.low %vm985_vm1, %vm984_vm3  ;;  %vm594_vm3 = vcmp.eq.s32.totalorder %v3311_v1, %v3409_v62 }
 0x1e0   : >> { %v684_v37 = vpop.permute.xlu0 %683  ;;  %v672_v38 = vpop.permute.xlu1 %671  ;;  %2471 = vmatmul.mubr.msk.bf16.vlgmr.msra.gmra.mrb[0].mxu1 %vm2230_vm4, %v3053_v36  ;;  %2551 = vmatmul.mubr.msk.bf16.vlgmr.msra.gmra.mrb[0].mxu0 %vm2230_vm4, %v3053_v36  ;;  %vm987_vm8 = vmor %vm590_vm5, %vm923_vm2  ;;  %vm593_vm5 = vcmp.eq.s32.totalorder %v3311_v1, %v3411_v63 }
 0x1e1   : >> { %vm922_vm6 = vcmp.eq.s32.totalorder %v3311_v1, %v672_v38  ;;  %vm925_vm9 = vcmp.eq.s32.totalorder %v3311_v1, %v684_v37 }
 0x1e2   : >> { %860 = vbcast.lane.b32.xlu0 %v3515_v21, 264  ;;  %856 = vbcast.lane.b32.xlu1 %v3515_v21, 256  ;;  %vm986_vm10 = vmor %vm589_vm7, %vm922_vm6 }
 0x1e3   : >> { %vm2232_vm11 = vmpackc.low %vm987_vm8, %vm986_vm10  ;;  %vm596_vm10 = vcmp.eq.s32.totalorder %v3311_v1, %v3414_v3 }
 0x1e4   : >> { %v692_v24 = vpop.permute.xlu0 %691  ;;  %v680_v39 = vpop.permute.xlu1 %679  ;;  %2474 = vmatprep.mubr.msk.bf16.mxu1 %vm2232_vm11, %v3053_v36  ;;  %2554 = vmatprep.mubr.msk.bf16.mxu0 %vm2232_vm11, %v3053_v36  ;;  %vm989_vm15 = vmor %vm592_vm12, %vm925_vm9  ;;  %vm595_vm12 = vcmp.eq.s32.totalorder %v3311_v1, %v3416_v4 }
 0x1e5   : >> { %vm924_vm13 = vcmp.eq.s32.totalorder %v3311_v1, %v680_v39  ;;  %vm927_vm0 = vcmp.eq.s32.totalorder %v3311_v1, %v692_v24 }
 0x1e6   : >> { %535 = vbcast.lane.b32.xlu0 %v3501_v33, 280  ;;  %531 = vbcast.lane.b32.xlu1 %v3501_v33, 272  ;;  %vm988_vm1 = vmor %vm591_vm14, %vm924_vm13 }
 0x1e7   : >> { %vm2234_vm2 = vmpackc.low %vm989_vm15, %vm988_vm1  ;;  %vm598_vm1 = vcmp.eq.s32.totalorder %v3311_v1, %v3420_v5 }
 0x1e8   : >> { %v700_v40 = vpop.permute.xlu0 %699  ;;  %v688_v41 = vpop.permute.xlu1 %687  ;;  %2475 = vmatmul.mubr.msk.bf16.gmra.mrb[4].mxu1 %vm2234_vm2, %v3053_v36  ;;  %2555 = vmatmul.mubr.msk.bf16.gmra.mrb[4].mxu0 %vm2234_vm2, %v3053_v36  ;;  %vm991_vm6 = vmor %vm594_vm3, %vm927_vm0  ;;  %vm597_vm3 = vcmp.eq.s32.totalorder %v3311_v1, %v3422_v6 }
 0x1e9   : >> { %vm926_vm4 = vcmp.eq.s32.totalorder %v3311_v1, %v688_v41  ;;  %vm929_vm7 = vcmp.eq.s32.totalorder %v3311_v1, %v700_v40 }
 0x1ea   : >> { %868 = vbcast.lane.b32.xlu0 %v3515_v21, 280  ;;  %864 = vbcast.lane.b32.xlu1 %v3515_v21, 272  ;;  %vm990_vm8 = vmor %vm593_vm5, %vm926_vm4 }
 0x1eb   : >> { %vm2236_vm9 = vmpackc.low %vm991_vm6, %vm990_vm8  ;;  %vm600_vm8 = vcmp.eq.s32.totalorder %v3311_v1, %v3426_v7 }
 0x1ec   : >> { %v708_v42 = vpop.permute.xlu0 %707  ;;  %v696_v43 = vpop.permute.xlu1 %695  ;;  %2478 = vmatprep.mubr.msk.bf16.mxu1 %vm2236_vm9, %v3053_v36  ;;  %2558 = vmatprep.mubr.msk.bf16.mxu0 %vm2236_vm9, %v3053_v36  ;;  %vm993_vm13 = vmor %vm596_vm10, %vm929_vm7  ;;  %vm599_vm10 = vcmp.eq.s32.totalorder %v3311_v1, %v3428_v8 }
 0x1ed   : >> { %vm928_vm11 = vcmp.eq.s32.totalorder %v3311_v1, %v696_v43  ;;  %vm931_vm14 = vcmp.eq.s32.totalorder %v3311_v1, %v708_v42 }
 0x1ee   : >> { %543 = vbcast.lane.b32.xlu0 %v3501_v33, 296  ;;  %539 = vbcast.lane.b32.xlu1 %v3501_v33, 288  ;;  %vm992_vm15 = vmor %vm595_vm12, %vm928_vm11 }
 0x1ef   : >> { %vm2238_vm0 = vmpackc.low %vm993_vm13, %vm992_vm15  ;;  %vm602_vm15 = vcmp.eq.s32.totalorder %v3311_v1, %v3432_v9 }
 0x1f0   : >> { %v716_v44 = vpop.permute.xlu0 %715  ;;  %v704_v45 = vpop.permute.xlu1 %703  ;;  %2479 = vmatmul.mubr.msk.bf16.gmra.mrb[8].mxu1 %vm2238_vm0, %v3053_v36  ;;  %2559 = vmatmul.mubr.msk.bf16.gmra.mrb[8].mxu0 %vm2238_vm0, %v3053_v36  ;;  %vm995_vm4 = vmor %vm598_vm1, %vm931_vm14  ;;  %vm601_vm1 = vcmp.eq.s32.totalorder %v3311_v1, %v3434_v10 }
 0x1f1   : >> { %vm930_vm2 = vcmp.eq.s32.totalorder %v3311_v1, %v704_v45  ;;  %vm933_vm5 = vcmp.eq.s32.totalorder %v3311_v1, %v716_v44 }
 0x1f2   : >> { %876 = vbcast.lane.b32.xlu0 %v3515_v21, 296  ;;  %872 = vbcast.lane.b32.xlu1 %v3515_v21, 288  ;;  %vm994_vm6 = vmor %vm597_vm3, %vm930_vm2 }
 0x1f3   : >> { %vm2240_vm7 = vmpackc.low %vm995_vm4, %vm994_vm6  ;;  %vm604_vm6 = vcmp.eq.s32.totalorder %v3311_v1, %v3438_v11 }
 0x1f4   : >> { %v727_v46 = vpop.permute.xlu0 %726  ;;  %v712_v47 = vpop.permute.xlu1 %711  ;;  %2482 = vmatprep.mubr.msk.bf16.mxu1 %vm2240_vm7, %v3053_v36  ;;  %2562 = vmatprep.mubr.msk.bf16.mxu0 %vm2240_vm7, %v3053_v36  ;;  %vm997_vm11 = vmor %vm600_vm8, %vm933_vm5  ;;  %vm603_vm8 = vcmp.eq.s32.totalorder %v3311_v1, %v3440_v12 }
 0x1f5   : >> { %vm932_vm9 = vcmp.eq.s32.totalorder %v3311_v1, %v712_v47  ;;  %vm935_vm12 = vcmp.eq.s32.totalorder %v3311_v1, %v727_v46 }
 0x1f6   : >> { %551 = vbcast.lane.b32.xlu0 %v3501_v33, 312  ;;  %547 = vbcast.lane.b32.xlu1 %v3501_v33, 304  ;;  %vm996_vm13 = vmor %vm599_vm10, %vm932_vm9 }
 0x1f7   : >> { %vm2242_vm14 = vmpackc.low %vm997_vm11, %vm996_vm13  ;;  %vm606_vm13 = vcmp.eq.s32.totalorder %v3311_v1, %v3444_v13 }
 0x1f8   : >> { %v735_v48 = vpop.permute.xlu0 %734  ;;  %v723_v49 = vpop.permute.xlu1 %722  ;;  %2483 = vmatmul.mubr.msk.bf16.gmra.mrb[12].mxu1 %vm2242_vm14, %v3053_v36  ;;  %2563 = vmatmul.mubr.msk.bf16.gmra.mrb[12].mxu0 %vm2242_vm14, %v3053_v36  ;;  %vm999_vm2 = vmor %vm602_vm15, %vm935_vm12  ;;  %vm605_vm15 = vcmp.eq.s32.totalorder %v3311_v1, %v3446_v14 }
 0x1f9   : >> { %vm934_vm0 = vcmp.eq.s32.totalorder %v3311_v1, %v723_v49  ;;  %vm937_vm3 = vcmp.eq.s32.totalorder %v3311_v1, %v735_v48 }
 0x1fa   : >> { %884 = vbcast.lane.b32.xlu0 %v3515_v21, 312  ;;  %880 = vbcast.lane.b32.xlu1 %v3515_v21, 304  ;;  %vm998_vm4 = vmor %vm601_vm1, %vm934_vm0 }
 0x1fb   : >> { %vm2244_vm5 = vmpackc.low %vm999_vm2, %vm998_vm4  ;;  %vm608_vm4 = vcmp.eq.s32.totalorder %v3311_v1, %v3450_v15 }
 0x1fc   : >> { %v743_v50 = vpop.permute.xlu0 %742  ;;  %v731_v51 = vpop.permute.xlu1 %730  ;;  %2486 = vmatprep.mubr.msk.bf16.mxu1 %vm2244_vm5, %v3053_v36  ;;  %2566 = vmatprep.mubr.msk.bf16.mxu0 %vm2244_vm5, %v3053_v36  ;;  %vm1001_vm9 = vmor %vm604_vm6, %vm937_vm3  ;;  %vm607_vm6 = vcmp.eq.s32.totalorder %v3311_v1, %v3452_v16 }
 0x1fd   : >> { %vm936_vm7 = vcmp.eq.s32.totalorder %v3311_v1, %v731_v51  ;;  %vm939_vm10 = vcmp.eq.s32.totalorder %v3311_v1, %v743_v50 }
 0x1fe   : >> { %559 = vbcast.lane.b32.xlu0 %v3501_v33, 328  ;;  %555 = vbcast.lane.b32.xlu1 %v3501_v33, 320  ;;  %vm1000_vm11 = vmor %vm603_vm8, %vm936_vm7 }
 0x1ff   : >> { %vm2246_vm12 = vmpackc.low %vm1001_vm9, %vm1000_vm11  ;;  %vm610_vm11 = vcmp.eq.s32.totalorder %v3311_v1, %v3456_v17 }
 0x200   : >> { %v751_v52 = vpop.permute.xlu0 %750  ;;  %v739_v53 = vpop.permute.xlu1 %738  ;;  %2487 = vmatmul.mubr.msk.bf16.gmra.mrb[16].mxu1 %vm2246_vm12, %v3053_v36  ;;  %2567 = vmatmul.mubr.msk.bf16.gmra.mrb[16].mxu0 %vm2246_vm12, %v3053_v36  ;;  %vm1003_vm0 = vmor %vm606_vm13, %vm939_vm10  ;;  %vm609_vm13 = vcmp.eq.s32.totalorder %v3311_v1, %v3458_v18 }
 0x201   : >> { %vm938_vm14 = vcmp.eq.s32.totalorder %v3311_v1, %v739_v53  ;;  %vm941_vm1 = vcmp.eq.s32.totalorder %v3311_v1, %v751_v52 }
 0x202   : >> { %892 = vbcast.lane.b32.xlu0 %v3515_v21, 328  ;;  %888 = vbcast.lane.b32.xlu1 %v3515_v21, 320  ;;  %vm1002_vm2 = vmor %vm605_vm15, %vm938_vm14 }
 0x203   : >> { %vm2248_vm3 = vmpackc.low %vm1003_vm0, %vm1002_vm2  ;;  %vm612_vm2 = vcmp.eq.s32.totalorder %v3311_v1, %v3462_v19 }
 0x204   : >> { %v759_v54 = vpop.permute.xlu0 %758  ;;  %v747_v55 = vpop.permute.xlu1 %746  ;;  %2490 = vmatprep.mubr.msk.bf16.mxu1 %vm2248_vm3, %v3053_v36  ;;  %2570 = vmatprep.mubr.msk.bf16.mxu0 %vm2248_vm3, %v3053_v36  ;;  %vm1005_vm7 = vmor %vm608_vm4, %vm941_vm1  ;;  %vm611_vm4 = vcmp.eq.s32.totalorder %v3311_v1, %v3464_v20 }
 0x205   : >> { %vm940_vm5 = vcmp.eq.s32.totalorder %v3311_v1, %v747_v55  ;;  %vm943_vm8 = vcmp.eq.s32.totalorder %v3311_v1, %v759_v54 }
 0x206   : >> { %567 = vbcast.lane.b32.xlu0 %v3501_v33, 344  ;;  %563 = vbcast.lane.b32.xlu1 %v3501_v33, 336  ;;  %vm1004_vm9 = vmor %vm607_vm6, %vm940_vm5 }
 0x207   : >> { %vm2250_vm10 = vmpackc.low %vm1005_vm7, %vm1004_vm9  ;;  %vm614_vm9 = vcmp.eq.s32.totalorder %v3311_v1, %v3468_v22 }
 0x208   : >> { %v767_v56 = vpop.permute.xlu0 %766  ;;  %v755_v57 = vpop.permute.xlu1 %754  ;;  %2491 = vmatmul.mubr.msk.bf16.gmra.mrb[20].mxu1 %vm2250_vm10, %v3053_v36  ;;  %2571 = vmatmul.mubr.msk.bf16.gmra.mrb[20].mxu0 %vm2250_vm10, %v3053_v36  ;;  %vm1007_vm14 = vmor %vm610_vm11, %vm943_vm8  ;;  %vm613_vm11 = vcmp.eq.s32.totalorder %v3311_v1, %v3470_v23 }
 0x209   : >> { %vm942_vm12 = vcmp.eq.s32.totalorder %v3311_v1, %v755_v57  ;;  %vm945_vm15 = vcmp.eq.s32.totalorder %v3311_v1, %v767_v56 }
 0x20a   : >> { %900 = vbcast.lane.b32.xlu0 %v3515_v21, 344  ;;  %896 = vbcast.lane.b32.xlu1 %v3515_v21, 336  ;;  %vm1006_vm0 = vmor %vm609_vm13, %vm942_vm12 }
 0x20b   : >> { %vm2252_vm1 = vmpackc.low %vm1007_vm14, %vm1006_vm0  ;;  %vm616_vm0 = vcmp.eq.s32.totalorder %v3311_v1, %v3474_v25 }
 0x20c   : >> { %v775_v58 = vpop.permute.xlu0 %774  ;;  %v763_v59 = vpop.permute.xlu1 %762  ;;  %2494 = vmatprep.mubr.msk.bf16.mxu1 %vm2252_vm1, %v3053_v36  ;;  %2574 = vmatprep.mubr.msk.bf16.mxu0 %vm2252_vm1, %v3053_v36  ;;  %vm1009_vm5 = vmor %vm612_vm2, %vm945_vm15  ;;  %vm615_vm2 = vcmp.eq.s32.totalorder %v3311_v1, %v3476_v26 }
 0x20d   : >> { %vm944_vm3 = vcmp.eq.s32.totalorder %v3311_v1, %v763_v59  ;;  %vm947_vm6 = vcmp.eq.s32.totalorder %v3311_v1, %v775_v58 }
 0x20e   : >> { %575 = vbcast.lane.b32.xlu0 %v3501_v33, 360  ;;  %571 = vbcast.lane.b32.xlu1 %v3501_v33, 352  ;;  %vm1008_vm7 = vmor %vm611_vm4, %vm944_vm3 }
 0x20f   : >> { %vm2254_vm8 = vmpackc.low %vm1009_vm5, %vm1008_vm7 }
 0x210   : >> { %v783_v60 = vpop.permute.xlu0 %782  ;;  %v771_v61 = vpop.permute.xlu1 %770  ;;  %2495 = vmatmul.mubr.msk.bf16.gmra.mrb[24].mxu1 %vm2254_vm8, %v3053_v36  ;;  %2575 = vmatmul.mubr.msk.bf16.gmra.mrb[24].mxu0 %vm2254_vm8, %v3053_v36  ;;  %vm1011_vm12 = vmor %vm614_vm9, %vm947_vm6  ;;  %vm618_vm6 = vcmp.eq.s32.totalorder %v3311_v1, %v3480_v27  ;;  %vm617_vm8 = vcmp.eq.s32.totalorder %v3311_v1, %v3482_v28 }
 0x211   : >> { %vm946_vm10 = vcmp.eq.s32.totalorder %v3311_v1, %v771_v61  ;;  %vm949_vm13 = vcmp.eq.s32.totalorder %v3311_v1, %v783_v60 }
 0x212   : >> { %908 = vbcast.lane.b32.xlu0 %v3515_v21, 360  ;;  %904 = vbcast.lane.b32.xlu1 %v3515_v21, 352  ;;  %vm1010_vm14 = vmor %vm613_vm11, %vm946_vm10 }
 0x213   : >> { %vm2256_vm15 = vmpackc.low %vm1011_vm12, %vm1010_vm14 }
 0x214   : >> { %v794_v62 = vpop.permute.xlu0 %793  ;;  %v779_v63 = vpop.permute.xlu1 %778  ;;  %2498 = vmatprep.mubr.msk.bf16.mxu1 %vm2256_vm15, %v3053_v36  ;;  %2578 = vmatprep.mubr.msk.bf16.mxu0 %vm2256_vm15, %v3053_v36  ;;  %vm1013_vm3 = vmor %vm616_vm0, %vm949_vm13  ;;  %vm619_vm0 = vcmp.eq.s32.totalorder %v3311_v1, %v3486_v30 }
 0x215   : >> { %vm948_vm1 = vcmp.eq.s32.totalorder %v3311_v1, %v779_v63  ;;  %vm951_vm4 = vcmp.eq.s32.totalorder %v3311_v1, %v794_v62 }
 0x216   : >> { %583 = vbcast.lane.b32.xlu0 %v3501_v33, 376  ;;  %579 = vbcast.lane.b32.xlu1 %v3501_v33, 368  ;;  %vm1012_vm5 = vmor %vm615_vm2, %vm948_vm1 }
 0x217   : >> { %vm2258_vm7 = vmpackc.low %vm1013_vm3, %vm1012_vm5 }
 0x218   : >> { %v469_v3 = vpop.permute.xlu0 %468  ;;  %v790_v4 = vpop.permute.xlu1 %789  ;;  %vm1015_vm9 = vmor %vm618_vm6, %vm951_vm4  ;;  %2499 = vmatmul.mubr.msk.bf16.gmra.mrb[28].mxu1 %vm2258_vm7, %v3053_v36  ;;  %2579 = vmatmul.mubr.msk.bf16.gmra.mrb[28].mxu0 %vm2258_vm7, %v3053_v36 }
 0x219   : >> { %vm950_vm10 = vcmp.eq.s32.totalorder %v3311_v1, %v790_v4  ;;  %vm620_vm13 = vcmp.eq.s32.totalorder %v3311_v1, %v469_v3 }
 0x21a   : >> { %vm1014_vm11 = vmor %vm617_vm8, %vm950_vm10  ;;  %916 = vbcast.lane.b32.xlu0 %v3515_v21, 376  ;;  %912 = vbcast.lane.b32.xlu1 %v3515_v21, 368 }
 0x21b   : >> { %vm2260_vm12 = vmpackc.low %vm1015_vm9, %vm1014_vm11 }
 0x21c   : >> { %v802_v5 = vpop.permute.xlu0 %801  ;;  %2502 = vmatprep.mubr.msk.bf16.mxu1 %vm2260_vm12, %v3053_v36  ;;  %2582 = vmatprep.mubr.msk.bf16.mxu0 %vm2260_vm12, %v3053_v36  ;;  %v798_v6 = vpop.permute.xlu1 %797 }
 0x21d   : >> { %vm953_vm14 = vcmp.eq.s32.totalorder %v3311_v1, %v802_v5  ;;  %vm952_vm15 = vcmp.eq.s32.totalorder %v3311_v1, %v798_v6 }
 0x21e   : >> { %vm1017_vm1 = vmor %vm620_vm13, %vm953_vm14 }
 0x21f   : >> { %vm1016_vm2 = vmor %vm619_vm0, %vm952_vm15 }
 0x220   : >> { %vm2262_vm3 = vmpackc.low %vm1017_vm1, %vm1016_vm2  ;;  %v477_v7 = vpop.permute.xlu0 %476  ;;  %v473_v8 = vpop.permute.xlu1 %472 }
 0x221   : >> { %2503 = vmatmul.mubr.msk.bf16.gmra.mrb[32].mxu1 %vm2262_vm3, %v3053_v36  ;;  %2583 = vmatmul.mubr.msk.bf16.gmra.mrb[32].mxu0 %vm2262_vm3, %v3053_v36  ;;  %vm622_vm4 = vcmp.eq.s32.totalorder %v3311_v1, %v477_v7  ;;  %vm621_vm7 = vcmp.eq.s32.totalorder %v3311_v1, %v473_v8 }
 0x224   : >> { %v810_v9 = vpop.permute.xlu0 %809  ;;  %v806_v10 = vpop.permute.xlu1 %805 }
 0x225   : >> { %vm955_vm5 = vcmp.eq.s32.totalorder %v3311_v1, %v810_v9  ;;  %vm954_vm6 = vcmp.eq.s32.totalorder %v3311_v1, %v806_v10 }
 0x226   : >> { %vm1019_vm8 = vmor %vm622_vm4, %vm955_vm5 }
 0x227   : >> { %vm1018_vm9 = vmor %vm621_vm7, %vm954_vm6 }
 0x228   : >> { %vm2264_vm10 = vmpackc.low %vm1019_vm8, %vm1018_vm9  ;;  %v485_v11 = vpop.permute.xlu0 %484  ;;  %v481_v12 = vpop.permute.xlu1 %480 }
 0x229   : >> { %2506 = vmatprep.mubr.msk.bf16.mxu1 %vm2264_vm10, %v3053_v36  ;;  %2586 = vmatprep.mubr.msk.bf16.mxu0 %vm2264_vm10, %v3053_v36  ;;  %vm624_vm11 = vcmp.eq.s32.totalorder %v3311_v1, %v485_v11  ;;  %vm623_vm14 = vcmp.eq.s32.totalorder %v3311_v1, %v481_v12 }
 0x22c   : >> { %v818_v13 = vpop.permute.xlu0 %817  ;;  %v814_v14 = vpop.permute.xlu1 %813 }
 0x22d   : >> { %vm957_vm12 = vcmp.eq.s32.totalorder %v3311_v1, %v818_v13  ;;  %vm956_vm13 = vcmp.eq.s32.totalorder %v3311_v1, %v814_v14 }
 0x22e   : >> { %vm1021_vm15 = vmor %vm624_vm11, %vm957_vm12 }
 0x22f   : >> { %vm1020_vm0 = vmor %vm623_vm14, %vm956_vm13 }
 0x230   : >> { %vm2266_vm1 = vmpackc.low %vm1021_vm15, %vm1020_vm0  ;;  %v493_v15 = vpop.permute.xlu0 %492  ;;  %v489_v16 = vpop.permute.xlu1 %488 }
 0x231   : >> { %2507 = vmatmul.mubr.msk.bf16.gmra.mrb[36].mxu1 %vm2266_vm1, %v3053_v36  ;;  %2587 = vmatmul.mubr.msk.bf16.gmra.mrb[36].mxu0 %vm2266_vm1, %v3053_v36  ;;  %vm626_vm2 = vcmp.eq.s32.totalorder %v3311_v1, %v493_v15  ;;  %vm625_vm5 = vcmp.eq.s32.totalorder %v3311_v1, %v489_v16 }
 0x234   : >> { %v826_v17 = vpop.permute.xlu0 %825  ;;  %v822_v18 = vpop.permute.xlu1 %821 }
 0x235   : >> { %vm959_vm3 = vcmp.eq.s32.totalorder %v3311_v1, %v826_v17  ;;  %vm958_vm4 = vcmp.eq.s32.totalorder %v3311_v1, %v822_v18 }
 0x236   : >> { %vm1023_vm6 = vmor %vm626_vm2, %vm959_vm3 }
 0x237   : >> { %vm1022_vm7 = vmor %vm625_vm5, %vm958_vm4 }
 0x238   : >> { %vm2268_vm8 = vmpackc.low %vm1023_vm6, %vm1022_vm7  ;;  %v501_v19 = vpop.permute.xlu0 %500  ;;  %v497_v20 = vpop.permute.xlu1 %496 }
 0x239   : >> { %2510 = vmatprep.mubr.msk.bf16.mxu1 %vm2268_vm8, %v3053_v36  ;;  %2590 = vmatprep.mubr.msk.bf16.mxu0 %vm2268_vm8, %v3053_v36  ;;  %vm628_vm9 = vcmp.eq.s32.totalorder %v3311_v1, %v501_v19  ;;  %vm627_vm12 = vcmp.eq.s32.totalorder %v3311_v1, %v497_v20 }
 0x23c   : >> { %v834_v22 = vpop.permute.xlu0 %833  ;;  %v830_v23 = vpop.permute.xlu1 %829 }
 0x23d   : >> { %vm961_vm10 = vcmp.eq.s32.totalorder %v3311_v1, %v834_v22  ;;  %vm960_vm11 = vcmp.eq.s32.totalorder %v3311_v1, %v830_v23 }
 0x23e   : >> { %vm1025_vm13 = vmor %vm628_vm9, %vm961_vm10 }
 0x23f   : >> { %vm1024_vm14 = vmor %vm627_vm12, %vm960_vm11 }
 0x240   : >> { %vm2270_vm15 = vmpackc.low %vm1025_vm13, %vm1024_vm14  ;;  %v509_v25 = vpop.permute.xlu0 %508  ;;  %v505_v26 = vpop.permute.xlu1 %504 }
 0x241   : >> { %2511 = vmatmul.mubr.msk.bf16.gmra.mrb[40].mxu1 %vm2270_vm15, %v3053_v36  ;;  %2591 = vmatmul.mubr.msk.bf16.gmra.mrb[40].mxu0 %vm2270_vm15, %v3053_v36  ;;  %vm630_vm0 = vcmp.eq.s32.totalorder %v3311_v1, %v509_v25  ;;  %vm629_vm3 = vcmp.eq.s32.totalorder %v3311_v1, %v505_v26 }
 0x244   : >> { %v842_v27 = vpop.permute.xlu0 %841  ;;  %v838_v28 = vpop.permute.xlu1 %837 }
 0x245   : >> { %vm963_vm1 = vcmp.eq.s32.totalorder %v3311_v1, %v842_v27  ;;  %vm962_vm2 = vcmp.eq.s32.totalorder %v3311_v1, %v838_v28 }
 0x246   : >> { %vm1027_vm4 = vmor %vm630_vm0, %vm963_vm1 }
 0x247   : >> { %vm1026_vm5 = vmor %vm629_vm3, %vm962_vm2 }
 0x248   : >> { %vm2272_vm6 = vmpackc.low %vm1027_vm4, %vm1026_vm5  ;;  %v517_v29 = vpop.permute.xlu0 %516  ;;  %v513_v30 = vpop.permute.xlu1 %512 }
 0x249   : >> { %2514 = vmatprep.mubr.msk.bf16.mxu1 %vm2272_vm6, %v3053_v36  ;;  %2594 = vmatprep.mubr.msk.bf16.mxu0 %vm2272_vm6, %v3053_v36  ;;  %vm632_vm7 = vcmp.eq.s32.totalorder %v3311_v1, %v517_v29  ;;  %vm631_vm10 = vcmp.eq.s32.totalorder %v3311_v1, %v513_v30 }
 0x24c   : >> { %v850_v31 = vpop.permute.xlu0 %849  ;;  %v846_v32 = vpop.permute.xlu1 %845 }
 0x24d   : >> { %vm965_vm8 = vcmp.eq.s32.totalorder %v3311_v1, %v850_v31  ;;  %vm964_vm9 = vcmp.eq.s32.totalorder %v3311_v1, %v846_v32 }
 0x24e   : >> { %vm1029_vm11 = vmor %vm632_vm7, %vm965_vm8 }
 0x24f   : >> { %vm1028_vm12 = vmor %vm631_vm10, %vm964_vm9 }
 0x250   : >> { %vm2274_vm13 = vmpackc.low %vm1029_vm11, %vm1028_vm12  ;;  %v528_v33 = vpop.permute.xlu0 %527  ;;  %v524_v34 = vpop.permute.xlu1 %523 }
 0x251   : >> { %2515 = vmatmul.mubr.msk.bf16.gmra.mrb[44].mxu1 %vm2274_vm13, %v3053_v36  ;;  %2595 = vmatmul.mubr.msk.bf16.gmra.mrb[44].mxu0 %vm2274_vm13, %v3053_v36  ;;  %vm634_vm14 = vcmp.eq.s32.totalorder %v3311_v1, %v528_v33  ;;  %vm633_vm1 = vcmp.eq.s32.totalorder %v3311_v1, %v524_v34 }
 0x254   : >> { %v861_v35 = vpop.permute.xlu0 %860  ;;  %v857_v21 = vpop.permute.xlu1 %856 }
 0x255   : >> { %vm967_vm15 = vcmp.eq.s32.totalorder %v3311_v1, %v861_v35  ;;  %vm966_vm0 = vcmp.eq.s32.totalorder %v3311_v1, %v857_v21 }
 0x256   : >> { %vm1031_vm2 = vmor %vm634_vm14, %vm967_vm15 }
 0x257   : >> { %vm1030_vm3 = vmor %vm633_vm1, %vm966_vm0 }
 0x258   : >> { %vm2276_vm4 = vmpackc.low %vm1031_vm2, %vm1030_vm3  ;;  %v536_v37 = vpop.permute.xlu0 %535  ;;  %v532_v38 = vpop.permute.xlu1 %531 }
 0x259   : >> { %2518 = vmatprep.mubr.msk.bf16.mxu1 %vm2276_vm4, %v3053_v36  ;;  %2598 = vmatprep.mubr.msk.bf16.mxu0 %vm2276_vm4, %v3053_v36  ;;  %vm636_vm5 = vcmp.eq.s32.totalorder %v3311_v1, %v536_v37  ;;  %vm635_vm8 = vcmp.eq.s32.totalorder %v3311_v1, %v532_v38 }
 0x25c   : >> { %v869_v24 = vpop.permute.xlu0 %868  ;;  %v865_v39 = vpop.permute.xlu1 %864 }
 0x25d   : >> { %vm969_vm6 = vcmp.eq.s32.totalorder %v3311_v1, %v869_v24  ;;  %vm968_vm7 = vcmp.eq.s32.totalorder %v3311_v1, %v865_v39 }
 0x25e   : >> { %vm1033_vm9 = vmor %vm636_vm5, %vm969_vm6 }
 0x25f   : >> { %vm1032_vm10 = vmor %vm635_vm8, %vm968_vm7 }
 0x260   : >> { %vm2278_vm11 = vmpackc.low %vm1033_vm9, %vm1032_vm10  ;;  %v544_v40 = vpop.permute.xlu0 %543  ;;  %v540_v41 = vpop.permute.xlu1 %539 }
 0x261   : >> { %2519 = vmatmul.mubr.msk.bf16.gmra.mrb[48].mxu1 %vm2278_vm11, %v3053_v36  ;;  %2599 = vmatmul.mubr.msk.bf16.gmra.mrb[48].mxu0 %vm2278_vm11, %v3053_v36  ;;  %vm638_vm12 = vcmp.eq.s32.totalorder %v3311_v1, %v544_v40  ;;  %vm637_vm15 = vcmp.eq.s32.totalorder %v3311_v1, %v540_v41 }
 0x264   : >> { %v877_v42 = vpop.permute.xlu0 %876  ;;  %v873_v43 = vpop.permute.xlu1 %872 }
 0x265   : >> { %vm971_vm13 = vcmp.eq.s32.totalorder %v3311_v1, %v877_v42  ;;  %vm970_vm14 = vcmp.eq.s32.totalorder %v3311_v1, %v873_v43 }
 0x266   : >> { %vm1035_vm0 = vmor %vm638_vm12, %vm971_vm13 }
 0x267   : >> { %vm1034_vm1 = vmor %vm637_vm15, %vm970_vm14 }
 0x268   : >> { %vm2280_vm2 = vmpackc.low %vm1035_vm0, %vm1034_vm1  ;;  %v552_v44 = vpop.permute.xlu0 %551  ;;  %v548_v45 = vpop.permute.xlu1 %547 }
 0x269   : >> { %2522 = vmatprep.mubr.msk.bf16.mxu1 %vm2280_vm2, %v3053_v36  ;;  %2602 = vmatprep.mubr.msk.bf16.mxu0 %vm2280_vm2, %v3053_v36  ;;  %vm640_vm3 = vcmp.eq.s32.totalorder %v3311_v1, %v552_v44  ;;  %vm639_vm6 = vcmp.eq.s32.totalorder %v3311_v1, %v548_v45 }
 0x26c   : >> { %v885_v46 = vpop.permute.xlu0 %884  ;;  %v881_v47 = vpop.permute.xlu1 %880 }
 0x26d   : >> { %vm973_vm4 = vcmp.eq.s32.totalorder %v3311_v1, %v885_v46  ;;  %vm972_vm5 = vcmp.eq.s32.totalorder %v3311_v1, %v881_v47 }
 0x26e   : >> { %vm1037_vm7 = vmor %vm640_vm3, %vm973_vm4 }
 0x26f   : >> { %vm1036_vm8 = vmor %vm639_vm6, %vm972_vm5 }
 0x270   : >> { %vm2282_vm9 = vmpackc.low %vm1037_vm7, %vm1036_vm8  ;;  %v560_v48 = vpop.permute.xlu0 %559  ;;  %v556_v49 = vpop.permute.xlu1 %555 }
 0x271   : >> { %2523 = vmatmul.mubr.msk.bf16.gmra.mrb[52].mxu1 %vm2282_vm9, %v3053_v36  ;;  %2603 = vmatmul.mubr.msk.bf16.gmra.mrb[52].mxu0 %vm2282_vm9, %v3053_v36  ;;  %vm642_vm10 = vcmp.eq.s32.totalorder %v3311_v1, %v560_v48  ;;  %vm641_vm13 = vcmp.eq.s32.totalorder %v3311_v1, %v556_v49 }
 0x274   : >> { %v893_v50 = vpop.permute.xlu0 %892  ;;  %v889_v51 = vpop.permute.xlu1 %888 }
 0x275   : >> { %vm975_vm11 = vcmp.eq.s32.totalorder %v3311_v1, %v893_v50  ;;  %vm974_vm12 = vcmp.eq.s32.totalorder %v3311_v1, %v889_v51 }
 0x276   : >> { %vm1039_vm14 = vmor %vm642_vm10, %vm975_vm11 }
 0x277   : >> { %vm1038_vm15 = vmor %vm641_vm13, %vm974_vm12 }
 0x278   : >> { %vm2284_vm0 = vmpackc.low %vm1039_vm14, %vm1038_vm15  ;;  %v568_v52 = vpop.permute.xlu0 %567  ;;  %v564_v53 = vpop.permute.xlu1 %563 }
 0x279   : >> { %2526 = vmatprep.mubr.msk.bf16.mxu1 %vm2284_vm0, %v3053_v36  ;;  %2606 = vmatprep.mubr.msk.bf16.mxu0 %vm2284_vm0, %v3053_v36  ;;  %vm644_vm1 = vcmp.eq.s32.totalorder %v3311_v1, %v568_v52  ;;  %vm643_vm4 = vcmp.eq.s32.totalorder %v3311_v1, %v564_v53 }
 0x27c   : >> { %v901_v54 = vpop.permute.xlu0 %900  ;;  %v897_v55 = vpop.permute.xlu1 %896 }
 0x27d   : >> { %vm977_vm2 = vcmp.eq.s32.totalorder %v3311_v1, %v901_v54  ;;  %vm976_vm3 = vcmp.eq.s32.totalorder %v3311_v1, %v897_v55 }
 0x27e   : >> { %vm1041_vm5 = vmor %vm644_vm1, %vm977_vm2 }
 0x27f   : >> { %vm1040_vm6 = vmor %vm643_vm4, %vm976_vm3 }
 0x280   : >> { %vm2286_vm7 = vmpackc.low %vm1041_vm5, %vm1040_vm6  ;;  %v576_v56 = vpop.permute.xlu0 %575  ;;  %v572_v57 = vpop.permute.xlu1 %571 }
 0x281   : >> { %2527 = vmatmul.mubr.msk.bf16.gmra.mrb[56].mxu1 %vm2286_vm7, %v3053_v36  ;;  %2607 = vmatmul.mubr.msk.bf16.gmra.mrb[56].mxu0 %vm2286_vm7, %v3053_v36  ;;  %vm646_vm8 = vcmp.eq.s32.totalorder %v3311_v1, %v576_v56  ;;  %vm645_vm11 = vcmp.eq.s32.totalorder %v3311_v1, %v572_v57 }
 0x284   : >> { %v909_v58 = vpop.permute.xlu0 %908  ;;  %v905_v59 = vpop.permute.xlu1 %904 }
 0x285   : >> { %vm979_vm9 = vcmp.eq.s32.totalorder %v3311_v1, %v909_v58  ;;  %vm978_vm10 = vcmp.eq.s32.totalorder %v3311_v1, %v905_v59 }
 0x286   : >> { %vm1043_vm12 = vmor %vm646_vm8, %vm979_vm9 }
 0x287   : >> { %vm1042_vm13 = vmor %vm645_vm11, %vm978_vm10 }
 0x288   : >> { %vm2288_vm14 = vmpackc.low %vm1043_vm12, %vm1042_vm13  ;;  %v584_v60 = vpop.permute.xlu0 %583  ;;  %v580_v61 = vpop.permute.xlu1 %579 }
 0x289   : >> { %2530 = vmatprep.mubr.msk.bf16.mxu1 %vm2288_vm14, %v3053_v36  ;;  %2610 = vmatprep.mubr.msk.bf16.mxu0 %vm2288_vm14, %v3053_v36  ;;  %vm648_vm15 = vcmp.eq.s32.totalorder %v3311_v1, %v584_v60  ;;  %vm647_vm2 = vcmp.eq.s32.totalorder %v3311_v1, %v580_v61 }
 0x28c   : >> { %v917_v62 = vpop.permute.xlu0 %916  ;;  %v913_v63 = vpop.permute.xlu1 %912 }
 0x28d   : >> { %vm981_vm0 = vcmp.eq.s32.totalorder %v3311_v1, %v917_v62  ;;  %vm980_vm1 = vcmp.eq.s32.totalorder %v3311_v1, %v913_v63 }
 0x28e   : >> { %vm1045_vm3 = vmor %vm648_vm15, %vm981_vm0 }
 0x28f   : >> { %vm1044_vm4 = vmor %vm647_vm2, %vm980_vm1 }
 0x290   : >> { %vm2290_vm5 = vmpackc.low %vm1045_vm3, %vm1044_vm4 }
 0x291   : >> { %2531 = vmatmul.mubr.msk.bf16.gmra.mrb[60].mxu1 %vm2290_vm5, %v3053_v36  ;;  %2611 = vmatmul.mubr.msk.bf16.gmra.mrb[60].mxu0 %vm2290_vm5, %v3053_v36 }
 0x2b3   : >> { %v2472_v3 = vpop.f32.mrb[0].mxu1  ;;  %v2552_v4 = vpop.f32.mrb[0].mxu0 }
 0x2b4   : >> { %v1666_v5 = vadd.f32 %v2552_v4, %v2472_v3  ;;  %v1320_v6 = vpop.f32.mrb[1].mxu1  ;;  %v1657_v7 = vpop.f32.mrb[1].mxu0 }
 0x2b5   : >> { %v1658_v8 = vadd.f32 %v1657_v7, %v1320_v6  ;;  %v2473_v9 = vpop.f32.mrb[2].mxu1  ;;  %v2553_v10 = vpop.f32.mrb[2].mxu0 }
 0x2b6   : >> { %1916 = vst [vmem:[%s3762_s2 + $0x10] sm:$0xff] %v1666_v5  ;;  %v1669_v11 = vadd.f32 %v2553_v10, %v2473_v9  ;;  %v1323_v36 = vpop.f32.mrb[3].mxu1  ;;  %v1660_v12 = vpop.f32.mrb[3].mxu0 }
 0x2b7   : >> { %1914 = vst [vmem:[%s3762_s2] sm:$0xff] %v1658_v8  ;;  %v1661_v13 = vadd.f32 %v1660_v12, %v1323_v36 }
 0x2b8   : >> { %1917 = vst [vmem:[%s3762_s2 + $0x18] sm:$0xff] %v1669_v11 }
 0x2b9   : >> { %1915 = vst [vmem:[%s3762_s2 + $0x8] sm:$0xff] %v1661_v13 }
 0x2bb   : >> { %v2476_v14 = vpop.f32.mrb[4].mxu1  ;;  %v2556_v15 = vpop.f32.mrb[4].mxu0 }
 0x2bc   : >> { %v1682_v16 = vadd.f32 %v2556_v15, %v2476_v14  ;;  %v1336_v17 = vpop.f32.mrb[5].mxu1  ;;  %v1673_v18 = vpop.f32.mrb[5].mxu0 }
 0x2bd   : >> { %v1674_v19 = vadd.f32 %v1673_v18, %v1336_v17  ;;  %v2477_v20 = vpop.f32.mrb[6].mxu1  ;;  %v2557_v22 = vpop.f32.mrb[6].mxu0 }
 0x2be   : >> { %1920 = vst [vmem:[%s3762_s2 + $0x30] sm:$0xff] %v1682_v16  ;;  %v1685_v23 = vadd.f32 %v2557_v22, %v2477_v20  ;;  %v1339_v25 = vpop.f32.mrb[7].mxu1  ;;  %v1676_v26 = vpop.f32.mrb[7].mxu0 }
 0x2bf   : >> { %1918 = vst [vmem:[%s3762_s2 + $0x20] sm:$0xff] %v1674_v19  ;;  %v1677_v27 = vadd.f32 %v1676_v26, %v1339_v25 }
 0x2c0   : >> { %1921 = vst [vmem:[%s3762_s2 + $0x38] sm:$0xff] %v1685_v23 }
 0x2c1   : >> { %1919 = vst [vmem:[%s3762_s2 + $0x28] sm:$0xff] %v1677_v27 }
 0x2c3   : >> { %v2480_v28 = vpop.f32.mrb[8].mxu1  ;;  %v2560_v29 = vpop.f32.mrb[8].mxu0 }
 0x2c4   : >> { %v1698_v30 = vadd.f32 %v2560_v29, %v2480_v28  ;;  %v1352_v31 = vpop.f32.mrb[9].mxu1  ;;  %v1689_v32 = vpop.f32.mrb[9].mxu0 }
 0x2c5   : >> { %v1690_v33 = vadd.f32 %v1689_v32, %v1352_v31  ;;  %v2481_v34 = vpop.f32.mrb[10].mxu1  ;;  %v2561_v35 = vpop.f32.mrb[10].mxu0 }
 0x2c6   : >> { %1924 = vst [vmem:[%s3762_s2 + $0x50] sm:$0xff] %v1698_v30  ;;  %v1701_v21 = vadd.f32 %v2561_v35, %v2481_v34  ;;  %v1355_v37 = vpop.f32.mrb[11].mxu1  ;;  %v1692_v38 = vpop.f32.mrb[11].mxu0 }
 0x2c7   : >> { %1922 = vst [vmem:[%s3762_s2 + $0x40] sm:$0xff] %v1690_v33  ;;  %v1693_v24 = vadd.f32 %v1692_v38, %v1355_v37 }
 0x2c8   : >> { %1925 = vst [vmem:[%s3762_s2 + $0x58] sm:$0xff] %v1701_v21 }
 0x2c9   : >> { %1923 = vst [vmem:[%s3762_s2 + $0x48] sm:$0xff] %v1693_v24 }
 0x2cb   : >> { %v2484_v39 = vpop.f32.mrb[12].mxu1  ;;  %v2564_v40 = vpop.f32.mrb[12].mxu0 }
 0x2cc   : >> { %v1714_v41 = vadd.f32 %v2564_v40, %v2484_v39  ;;  %v1368_v42 = vpop.f32.mrb[13].mxu1  ;;  %v1705_v43 = vpop.f32.mrb[13].mxu0 }
 0x2cd   : >> { %v1706_v44 = vadd.f32 %v1705_v43, %v1368_v42  ;;  %v2485_v45 = vpop.f32.mrb[14].mxu1  ;;  %v2565_v46 = vpop.f32.mrb[14].mxu0 }
 0x2ce   : >> { %1928 = vst [vmem:[%s3762_s2 + $0x70] sm:$0xff] %v1714_v41  ;;  %v1717_v47 = vadd.f32 %v2565_v46, %v2485_v45  ;;  %v1371_v48 = vpop.f32.mrb[15].mxu1  ;;  %v1708_v49 = vpop.f32.mrb[15].mxu0 }
 0x2cf   : >> { %1926 = vst [vmem:[%s3762_s2 + $0x60] sm:$0xff] %v1706_v44  ;;  %v1709_v50 = vadd.f32 %v1708_v49, %v1371_v48 }
 0x2d0   : >> { %1929 = vst [vmem:[%s3762_s2 + $0x78] sm:$0xff] %v1717_v47 }
 0x2d1   : >> { %1927 = vst [vmem:[%s3762_s2 + $0x68] sm:$0xff] %v1709_v50 }
 0x2d3   : >> { %v2488_v51 = vpop.f32.mrb[16].mxu1  ;;  %v2568_v52 = vpop.f32.mrb[16].mxu0 }
 0x2d4   : >> { %v1730_v53 = vadd.f32 %v2568_v52, %v2488_v51  ;;  %v1384_v54 = vpop.f32.mrb[17].mxu1  ;;  %v1721_v55 = vpop.f32.mrb[17].mxu0 }
 0x2d5   : >> { %v1722_v56 = vadd.f32 %v1721_v55, %v1384_v54  ;;  %v2489_v57 = vpop.f32.mrb[18].mxu1  ;;  %v2569_v58 = vpop.f32.mrb[18].mxu0 }
 0x2d6   : >> { %1932 = vst [vmem:[%s3762_s2 + $0x90] sm:$0xff] %v1730_v53  ;;  %v1733_v59 = vadd.f32 %v2569_v58, %v2489_v57  ;;  %v1387_v60 = vpop.f32.mrb[19].mxu1  ;;  %v1724_v61 = vpop.f32.mrb[19].mxu0 }
 0x2d7   : >> { %1930 = vst [vmem:[%s3762_s2 + $0x80] sm:$0xff] %v1722_v56  ;;  %v1725_v62 = vadd.f32 %v1724_v61, %v1387_v60 }
 0x2d8   : >> { %1933 = vst [vmem:[%s3762_s2 + $0x98] sm:$0xff] %v1733_v59 }
 0x2d9   : >> { %1931 = vst [vmem:[%s3762_s2 + $0x88] sm:$0xff] %v1725_v62 }
 0x2db   : >> { %v2492_v63 = vpop.f32.mrb[20].mxu1  ;;  %v2572_v3 = vpop.f32.mrb[20].mxu0 }
 0x2dc   : >> { %v1746_v4 = vadd.f32 %v2572_v3, %v2492_v63  ;;  %v1400_v5 = vpop.f32.mrb[21].mxu1  ;;  %v1737_v6 = vpop.f32.mrb[21].mxu0 }
 0x2dd   : >> { %v1738_v7 = vadd.f32 %v1737_v6, %v1400_v5  ;;  %v2493_v8 = vpop.f32.mrb[22].mxu1  ;;  %v2573_v9 = vpop.f32.mrb[22].mxu0 }
 0x2de   : >> { %1936 = vst [vmem:[%s3762_s2 + $0xb0] sm:$0xff] %v1746_v4  ;;  %v1749_v10 = vadd.f32 %v2573_v9, %v2493_v8  ;;  %v1403_v11 = vpop.f32.mrb[23].mxu1  ;;  %v1740_v36 = vpop.f32.mrb[23].mxu0 }
 0x2df   : >> { %1934 = vst [vmem:[%s3762_s2 + $0xa0] sm:$0xff] %v1738_v7  ;;  %v1741_v12 = vadd.f32 %v1740_v36, %v1403_v11 }
 0x2e0   : >> { %1937 = vst [vmem:[%s3762_s2 + $0xb8] sm:$0xff] %v1749_v10 }
 0x2e1   : >> { %1935 = vst [vmem:[%s3762_s2 + $0xa8] sm:$0xff] %v1741_v12 }
 0x2e3   : >> { %v2496_v13 = vpop.f32.mrb[24].mxu1  ;;  %v2576_v14 = vpop.f32.mrb[24].mxu0 }
 0x2e4   : >> { %v1762_v15 = vadd.f32 %v2576_v14, %v2496_v13  ;;  %v1416_v16 = vpop.f32.mrb[25].mxu1  ;;  %v1753_v17 = vpop.f32.mrb[25].mxu0 }
 0x2e5   : >> { %v1754_v18 = vadd.f32 %v1753_v17, %v1416_v16  ;;  %v2497_v19 = vpop.f32.mrb[26].mxu1  ;;  %v2577_v20 = vpop.f32.mrb[26].mxu0 }
 0x2e6   : >> { %1940 = vst [vmem:[%s3762_s2 + $0xd0] sm:$0xff] %v1762_v15  ;;  %v1765_v22 = vadd.f32 %v2577_v20, %v2497_v19  ;;  %v1419_v23 = vpop.f32.mrb[27].mxu1  ;;  %v1756_v25 = vpop.f32.mrb[27].mxu0 }
 0x2e7   : >> { %1938 = vst [vmem:[%s3762_s2 + $0xc0] sm:$0xff] %v1754_v18  ;;  %v1757_v26 = vadd.f32 %v1756_v25, %v1419_v23 }
 0x2e8   : >> { %1941 = vst [vmem:[%s3762_s2 + $0xd8] sm:$0xff] %v1765_v22 }
 0x2e9   : >> { %1939 = vst [vmem:[%s3762_s2 + $0xc8] sm:$0xff] %v1757_v26 }
 0x2eb   : >> { %v2500_v27 = vpop.f32.mrb[28].mxu1  ;;  %v2580_v28 = vpop.f32.mrb[28].mxu0 }
 0x2ec   : >> { %v1778_v29 = vadd.f32 %v2580_v28, %v2500_v27  ;;  %v1432_v30 = vpop.f32.mrb[29].mxu1  ;;  %v1769_v31 = vpop.f32.mrb[29].mxu0 }
 0x2ed   : >> { %v1770_v32 = vadd.f32 %v1769_v31, %v1432_v30  ;;  %v2501_v33 = vpop.f32.mrb[30].mxu1  ;;  %v2581_v34 = vpop.f32.mrb[30].mxu0 }
 0x2ee   : >> { %1944 = vst [vmem:[%s3762_s2 + $0xf0] sm:$0xff] %v1778_v29  ;;  %v1781_v35 = vadd.f32 %v2581_v34, %v2501_v33  ;;  %v1435_v21 = vpop.f32.mrb[31].mxu1  ;;  %v1772_v37 = vpop.f32.mrb[31].mxu0 }
 0x2ef   : >> { %1942 = vst [vmem:[%s3762_s2 + $0xe0] sm:$0xff] %v1770_v32  ;;  %v1773_v38 = vadd.f32 %v1772_v37, %v1435_v21 }
 0x2f0   : >> { %1945 = vst [vmem:[%s3762_s2 + $0xf8] sm:$0xff] %v1781_v35 }
 0x2f1   : >> { %1943 = vst [vmem:[%s3762_s2 + $0xe8] sm:$0xff] %v1773_v38 }
 0x2f4   : >> { %v2504_v24 = vpop.f32.mrb[32].mxu1  ;;  %v2584_v39 = vpop.f32.mrb[32].mxu0 }
 0x2f5   : >> { %v1794_v40 = vadd.f32 %v2584_v39, %v2504_v24  ;;  %v1448_v41 = vpop.f32.mrb[33].mxu1  ;;  %v1785_v42 = vpop.f32.mrb[33].mxu0 }
 0x2f6   : >> { %v1786_v43 = vadd.f32 %v1785_v42, %v1448_v41  ;;  %v2505_v44 = vpop.f32.mrb[34].mxu1  ;;  %v2585_v45 = vpop.f32.mrb[34].mxu0 }
 0x2f7   : >> { %1948 = vst [vmem:[%s3762_s2 + $0x110] sm:$0xff] %v1794_v40  ;;  %v1797_v46 = vadd.f32 %v2585_v45, %v2505_v44  ;;  %v1451_v47 = vpop.f32.mrb[35].mxu1  ;;  %v1788_v48 = vpop.f32.mrb[35].mxu0 }
 0x2f8   : >> { %1946 = vst [vmem:[%s3762_s2 + $0x100] sm:$0xff] %v1786_v43  ;;  %v1789_v49 = vadd.f32 %v1788_v48, %v1451_v47 }
 0x2f9   : >> { %1949 = vst [vmem:[%s3762_s2 + $0x118] sm:$0xff] %v1797_v46 }
 0x2fa   : >> { %1947 = vst [vmem:[%s3762_s2 + $0x108] sm:$0xff] %v1789_v49 }
 0x304   : >> { %v2508_v50 = vpop.f32.mrb[36].mxu1  ;;  %v2588_v51 = vpop.f32.mrb[36].mxu0 }
 0x305   : >> { %v1810_v52 = vadd.f32 %v2588_v51, %v2508_v50  ;;  %v1464_v53 = vpop.f32.mrb[37].mxu1  ;;  %v1801_v54 = vpop.f32.mrb[37].mxu0 }
 0x306   : >> { %v1802_v55 = vadd.f32 %v1801_v54, %v1464_v53  ;;  %v2509_v56 = vpop.f32.mrb[38].mxu1  ;;  %v2589_v57 = vpop.f32.mrb[38].mxu0 }
 0x307   : >> { %1952 = vst [vmem:[%s3762_s2 + $0x130] sm:$0xff] %v1810_v52  ;;  %v1813_v58 = vadd.f32 %v2589_v57, %v2509_v56  ;;  %v1467_v59 = vpop.f32.mrb[39].mxu1  ;;  %v1804_v60 = vpop.f32.mrb[39].mxu0 }
 0x308   : >> { %1950 = vst [vmem:[%s3762_s2 + $0x120] sm:$0xff] %v1802_v55  ;;  %v1805_v61 = vadd.f32 %v1804_v60, %v1467_v59 }
 0x309   : >> { %1953 = vst [vmem:[%s3762_s2 + $0x138] sm:$0xff] %v1813_v58 }
 0x30a   : >> { %1951 = vst [vmem:[%s3762_s2 + $0x128] sm:$0xff] %v1805_v61 }
 0x314   : >> { %v2512_v62 = vpop.f32.mrb[40].mxu1  ;;  %v2592_v63 = vpop.f32.mrb[40].mxu0 }
 0x315   : >> { %v1826_v3 = vadd.f32 %v2592_v63, %v2512_v62  ;;  %v1480_v4 = vpop.f32.mrb[41].mxu1  ;;  %v1817_v5 = vpop.f32.mrb[41].mxu0 }
 0x316   : >> { %v1818_v6 = vadd.f32 %v1817_v5, %v1480_v4  ;;  %v2513_v7 = vpop.f32.mrb[42].mxu1  ;;  %v2593_v8 = vpop.f32.mrb[42].mxu0 }
 0x317   : >> { %1956 = vst [vmem:[%s3762_s2 + $0x150] sm:$0xff] %v1826_v3  ;;  %v1829_v9 = vadd.f32 %v2593_v8, %v2513_v7  ;;  %v1483_v10 = vpop.f32.mrb[43].mxu1  ;;  %v1820_v11 = vpop.f32.mrb[43].mxu0 }
 0x318   : >> { %1954 = vst [vmem:[%s3762_s2 + $0x140] sm:$0xff] %v1818_v6  ;;  %v1821_v36 = vadd.f32 %v1820_v11, %v1483_v10 }
 0x319   : >> { %1957 = vst [vmem:[%s3762_s2 + $0x158] sm:$0xff] %v1829_v9 }
 0x31a   : >> { %1955 = vst [vmem:[%s3762_s2 + $0x148] sm:$0xff] %v1821_v36 }
 0x324   : >> { %v2516_v12 = vpop.f32.mrb[44].mxu1  ;;  %v2596_v13 = vpop.f32.mrb[44].mxu0 }
 0x325   : >> { %v1842_v14 = vadd.f32 %v2596_v13, %v2516_v12  ;;  %v1496_v15 = vpop.f32.mrb[45].mxu1  ;;  %v1833_v16 = vpop.f32.mrb[45].mxu0 }
 0x326   : >> { %v1834_v17 = vadd.f32 %v1833_v16, %v1496_v15  ;;  %v2517_v18 = vpop.f32.mrb[46].mxu1  ;;  %v2597_v19 = vpop.f32.mrb[46].mxu0 }
 0x327   : >> { %1960 = vst [vmem:[%s3762_s2 + $0x170] sm:$0xff] %v1842_v14  ;;  %v1845_v20 = vadd.f32 %v2597_v19, %v2517_v18  ;;  %v1499_v22 = vpop.f32.mrb[47].mxu1  ;;  %v1836_v23 = vpop.f32.mrb[47].mxu0 }
 0x328   : >> { %1958 = vst [vmem:[%s3762_s2 + $0x160] sm:$0xff] %v1834_v17  ;;  %v1837_v25 = vadd.f32 %v1836_v23, %v1499_v22 }
 0x329   : >> { %1961 = vst [vmem:[%s3762_s2 + $0x178] sm:$0xff] %v1845_v20 }
 0x32a   : >> { %1959 = vst [vmem:[%s3762_s2 + $0x168] sm:$0xff] %v1837_v25 }
 0x334   : >> { %v2520_v26 = vpop.f32.mrb[48].mxu1  ;;  %v2600_v27 = vpop.f32.mrb[48].mxu0 }
 0x335   : >> { %v1858_v28 = vadd.f32 %v2600_v27, %v2520_v26  ;;  %v1512_v29 = vpop.f32.mrb[49].mxu1  ;;  %v1849_v30 = vpop.f32.mrb[49].mxu0 }
 0x336   : >> { %v1850_v31 = vadd.f32 %v1849_v30, %v1512_v29  ;;  %v2521_v32 = vpop.f32.mrb[50].mxu1  ;;  %v2601_v33 = vpop.f32.mrb[50].mxu0 }
 0x337   : >> { %1964 = vst [vmem:[%s3762_s2 + $0x190] sm:$0xff] %v1858_v28  ;;  %v1861_v34 = vadd.f32 %v2601_v33, %v2521_v32  ;;  %v1515_v35 = vpop.f32.mrb[51].mxu1  ;;  %v1852_v21 = vpop.f32.mrb[51].mxu0 }
 0x338   : >> { %1962 = vst [vmem:[%s3762_s2 + $0x180] sm:$0xff] %v1850_v31  ;;  %v1853_v37 = vadd.f32 %v1852_v21, %v1515_v35 }
 0x339   : >> { %1965 = vst [vmem:[%s3762_s2 + $0x198] sm:$0xff] %v1861_v34 }
 0x33a   : >> { %1963 = vst [vmem:[%s3762_s2 + $0x188] sm:$0xff] %v1853_v37 }
 0x344   : >> { %v2524_v38 = vpop.f32.mrb[52].mxu1  ;;  %v2604_v24 = vpop.f32.mrb[52].mxu0 }
 0x345   : >> { %v1874_v39 = vadd.f32 %v2604_v24, %v2524_v38  ;;  %v1528_v40 = vpop.f32.mrb[53].mxu1  ;;  %v1865_v41 = vpop.f32.mrb[53].mxu0 }
 0x346   : >> { %v1866_v42 = vadd.f32 %v1865_v41, %v1528_v40  ;;  %v2525_v43 = vpop.f32.mrb[54].mxu1  ;;  %v2605_v44 = vpop.f32.mrb[54].mxu0 }
 0x347   : >> { %1968 = vst [vmem:[%s3762_s2 + $0x1b0] sm:$0xff] %v1874_v39  ;;  %v1877_v45 = vadd.f32 %v2605_v44, %v2525_v43  ;;  %v1531_v46 = vpop.f32.mrb[55].mxu1  ;;  %v1868_v47 = vpop.f32.mrb[55].mxu0 }
 0x348   : >> { %1966 = vst [vmem:[%s3762_s2 + $0x1a0] sm:$0xff] %v1866_v42  ;;  %v1869_v48 = vadd.f32 %v1868_v47, %v1531_v46 }
 0x349   : >> { %1969 = vst [vmem:[%s3762_s2 + $0x1b8] sm:$0xff] %v1877_v45 }
 0x34a   : >> { %1967 = vst [vmem:[%s3762_s2 + $0x1a8] sm:$0xff] %v1869_v48 }
 0x354   : >> { %v2528_v49 = vpop.f32.mrb[56].mxu1  ;;  %v2608_v50 = vpop.f32.mrb[56].mxu0 }
 0x355   : >> { %v1890_v51 = vadd.f32 %v2608_v50, %v2528_v49  ;;  %v1544_v52 = vpop.f32.mrb[57].mxu1  ;;  %v1881_v53 = vpop.f32.mrb[57].mxu0 }
 0x356   : >> { %v1882_v54 = vadd.f32 %v1881_v53, %v1544_v52  ;;  %v2529_v55 = vpop.f32.mrb[58].mxu1  ;;  %v2609_v56 = vpop.f32.mrb[58].mxu0 }
 0x357   : >> { %1972 = vst [vmem:[%s3762_s2 + $0x1d0] sm:$0xff] %v1890_v51  ;;  %v1893_v57 = vadd.f32 %v2609_v56, %v2529_v55  ;;  %v1547_v58 = vpop.f32.mrb[59].mxu1  ;;  %v1884_v59 = vpop.f32.mrb[59].mxu0 }
 0x358   : >> { %1970 = vst [vmem:[%s3762_s2 + $0x1c0] sm:$0xff] %v1882_v54  ;;  %v1885_v60 = vadd.f32 %v1884_v59, %v1547_v58 }
 0x359   : >> { %1973 = vst [vmem:[%s3762_s2 + $0x1d8] sm:$0xff] %v1893_v57 }
 0x35a   : >> { %1971 = vst [vmem:[%s3762_s2 + $0x1c8] sm:$0xff] %v1885_v60 }
 0x364   : >> { %v2532_v61 = vpop.f32.mrb[60].mxu1  ;;  %v2612_v62 = vpop.f32.mrb[60].mxu0  ;;  %266 = sbr.rel (!%p264_p3) target bundleno = 138 (0x8a), region = 103 }
 0x365   : >> { %v1906_v63 = vadd.f32 %v2612_v62, %v2532_v61  ;;  %v1560_v3 = vpop.f32.mrb[61].mxu1  ;;  %v1897_v4 = vpop.f32.mrb[61].mxu0 }
 0x366   : >> { %v1898_v5 = vadd.f32 %v1897_v4, %v1560_v3  ;;  %v2533_v6 = vpop.f32.mrb[62].mxu1  ;;  %v2613_v7 = vpop.f32.mrb[62].mxu0 }
 0x367   : >> { %1976 = vst [vmem:[%s3762_s2 + $0x1f0] sm:$0xff] %v1906_v63  ;;  %v1909_v8 = vadd.f32 %v2613_v7, %v2533_v6  ;;  %v1563_v9 = vpop.f32.mrb[63].mxu1  ;;  %v1900_v10 = vpop.f32.mrb[63].mxu0 }
 0x368   : >> { %1974 = vst [vmem:[%s3762_s2 + $0x1e0] sm:$0xff] %v1898_v5  ;;  %v1901_v11 = vadd.f32 %v1900_v10, %v1563_v9 }
 0x369   : >> { %1977 = vst [vmem:[%s3762_s2 + $0x1f8] sm:$0xff] %v1909_v8 }
 0x36a   : >> { %1975 = vst [vmem:[%s3762_s2 + $0x1e8] sm:$0xff] %v1901_v11 }
 0x36b   : > { %s2367_s27 = sshll.u32 %s3022_s21, 4  ;;  %s2373_s11 = sshll.u32 %s3026_s22, 11 }
 0x36c   : > { %s1992_s10 = sadd.s32 %s2373_s11, %s2367_s27  ;;  %s2011_s28 = sshll.u32 %s255_s29, 4  ;;  %s2012_s28 = int_to_ptr.vmem [resolvable:$true] %s2011_s28 }
 0x36d   : > { %s2369_s18 = sshll.u32 %s1992_s10, 7  ;;  %s3923_s3 = sld [smem:[#allocation19_spill]] }
 0x36e   : > { %s3054_s7 = smov 2048   ;;  %p3924_p1 = scmp.ne.s32.totalorder %s3910_s30, 0 }
 0x36f   : > { %s3055_s15 = smov 4096   ;;  %s3056_s14 = smov 16  }
 0x370   : > { %2688 = sst [smem:[#allocation10]] (%p3924_p1), %s3054_s7  ;;  %s3057_s21 = smov 128  }
 0x371   : > { %2689 = sst [smem:[#allocation10 + $0x1]] (%p3924_p1), %s3055_s15  ;;  %s3058_s22 = smov 8  }
 0x372   : > { %2690 = sst [smem:[#allocation10 + $0x2]] (%p3924_p1), %s3056_s14  ;;  %s3059_s6 = smov [#allocation9]  }
 0x373   : > { %s1994_s8 = scalar_lea.hbm %s3923_s3, %s2369_s18  ;;  %2691 = sst [smem:[#allocation10 + $0x3]] (%p3924_p1), %s3057_s21 }
 0x374   : > { %2692 = sst [smem:[#allocation10 + $0x4]] (%p3924_p1), %s3057_s21  ;;  %s3060_s29 = smov 0  }
 0x375   : > { %2693 = sst [smem:[#allocation10 + $0x5]] (%p3924_p1), %s3058_s22 }
 0x376   : > { %2694 = dma.general (%p3924_p1), %s2012_s28, 131072, %s1994_s8, %s1979_s26, %s3059_s6, [#allocation10], %s3060_s29, 0  }
 0x377 PF: > { %s3925_s2 = sld [smem:[#allocation14_spill]]  ;;  %s3926_s27 = sld [smem:[#allocation15_spill]] }
 0x378   : > { %p2716_p4 = scmp.ge.s32.totalorder %s3038_s25, 2 }
 0x37d   : > { %s2039_s11 = sand.u32 1, %s3925_s2   ;;  %p3927_p6 = scmp.ne.s32.totalorder %s3926_s27, 0 }
 0x37e   : > { %s2040_s10 = scalar_lea.sflag [#allocation4], %s2039_s11 }
 0x37f   : > { %p2708_p10 = pnand %p2716_p4, %p3927_p6 }
 0x381   : > { %2993 = dma.done.wait (!%p2708_p10), %s2040_s10, 131072  }
 0x382   : > { %2995 = vsyncadd (!%p2708_p10), %s2040_s10, 4294836224  ;;  %s21_s25 = sadd.s32 1, %s3038_s25   ;;  %s3928_s30 = sld [smem:[#allocation16_spill]] }
 0x383   : > { %p18_p13 = scmp.ge.s32.totalorder %s21_s25, 10   ;;  %s3929_s15 = smov %s3002_s16 }
 0x384   : > { %s3930_s16 = smov %s3006_s17  ;;  %s3931_s17 = smov %s3254_s4 }
 0x385   : > { %s3932_s18 = smov %s3014_s19  ;;  %s3933_s19 = smov %s3018_s20 }
 0x386   : > { %s3934_s20 = smov %s3246_s13  ;;  %s3935_s21 = smov %s3030_s23 }
 0x387   : > { %s3936_s22 = smov %s3034_s24  ;;  %s3938_s24 = smov %s3944_s9 }
 0x388   : > { %s3937_s23 = smov %s3928_s30  ;;  %20 = sbr.rel (!%p18_p13) target bundleno = 14 (0xe), region = 114 }
 0x38f   :  { %2045 = vsyncpa [#allocation3], 1 }
 0x390   :  { %2047 = vsyncpa [#allocation3 + $0x1], 1 }
 0x391   :  { %2048 = vsyncpa [#allocation6], 1 }
 0x392   :  { %2049 = vsyncpa [#allocation4], 1 }
 0x393   :  { %2051 = vsyncpa [#allocation4 + $0x1], 1 }

</bundles_post_ra>
